<compile_context>
chip_gen: v5e
topology: v5e:2x2
jax: 0.10.0
libtpu: 0.0.40
codegen_flags: <defaults>
</compile_context>

<pallas_src>
import numpy as np
import jax
import jax.numpy as jnp
from jax import lax
from jax.experimental import pallas as pl
from jax.experimental.pallas import tpu as pltpu


# Row layout of the packed small-parameter array (shape (15 + NOUT, H)):
#   0:w1  1:b1  2:bt1  3:th1  4:b2  5:bt2  6:th2  7:b3  8:bt3  9:th3
#   10:b4 11:bt4 12:bt5 13:th5 14:b5 (first NOUT lanes) 15..15+NOUT-1: w5^T
def _make_kernel(T, B, H, NOUT, OUT_LANES):
    f32 = jnp.float32
    C_CUR = H                 # lanes [H, H+NOUT)        -> current (cur_out5)
    C_MEM = H + NOUT          # lane  H+NOUT             -> mean(mem_out5)
    C_S23 = H + NOUT + 1      # lane  H+NOUT+1 (row 0,0) -> spk_23 scalar
    inv_h = 1.0 / float(H)
    inv_tbh = 1.0 / float(T * B * H)

    def kernel(x_ref, pp_ref, w_ref, out_ref, cur1_scr):
        # ---- hoisted, time-invariant prologue --------------------------------
        w1  = pp_ref[0:1, :]
        b1  = pp_ref[1:2, :]
        bt1 = jnp.clip(pp_ref[2:3, :], 0.0, 1.0)
        th1 = pp_ref[3:4, :]
        b2  = pp_ref[4:5, :]
        bt2 = jnp.clip(pp_ref[5:6, :], 0.0, 1.0)
        th2 = pp_ref[6:7, :]
        b3  = pp_ref[7:8, :]
        bt3 = jnp.clip(pp_ref[8:9, :], 0.0, 1.0)
        th3 = pp_ref[9:10, :]
        b4  = pp_ref[10:11, :]
        bt4 = jnp.clip(pp_ref[11:12, :], 0.0, 1.0)
        bt5 = jnp.clip(pp_ref[12:13, :], 0.0, 1.0)
        th5 = pp_ref[13:14, :]
        b5  = pp_ref[14:15, 0:NOUT]            # (1, NOUT)
        w5t = pp_ref[15:15 + NOUT, :]          # (NOUT, H)

        w2 = w_ref[0]                          # (H, H)
        w3 = w_ref[1]
        w4 = w_ref[2]

        # Layer-1 (in_features=1) currents for ALL time steps at once (VPU):
        # (T,B,1) * (1,H) + (1,H) -> (T,B,H), written to VMEM scratch.
        cur1_scr[...] = x_ref[...] * w1 + b1

        zeros_bh = jnp.zeros((B, H), f32)

        # ---- T-step recurrence ------------------------------------------------
        def step(t, carry):
            m1, m2, m3, m4, m5, acc = carry
            cur1 = cur1_scr[t]                                   # (B, H)

            # layer 1: lif1 (reset='subtract')
            rst1 = (m1 - th1 > 0).astype(f32)
            m1 = bt1 * m1 + cur1 - rst1 * th1
            spk1 = (m1 - th1 > 0).astype(f32)

            # layer 2: fc2 + lif2 (reset='subtract')              (MXU)
            cur2 = jnp.dot(spk1, w2, preferred_element_type=f32) + b2
            rst2 = (m2 - th2 > 0).astype(f32)
            m2 = bt2 * m2 + cur2 - rst2 * th2
            spk2 = (m2 - th2 > 0).astype(f32)

            # layer 3: fc3 + lif3 (reset='subtract'); spk3 unused (MXU)
            cur3 = jnp.dot(spk2, w3, preferred_element_type=f32) + b3
            rst3 = (m3 - th3 > 0).astype(f32)
            m3 = bt3 * m3 + cur3 - rst3 * th3

            # layer 4: fc4(mem3) + lif4 (reset='none'); spk4 unused (MXU)
            cur4 = jnp.dot(m3, w4, preferred_element_type=f32) + b4
            m4 = bt4 * m4 + cur4

            # layer 5: fc5(mem4) + lif5 (reset='none'); NOUT==1 -> VPU+lane reduce
            if NOUT == 1:
                cur5 = jnp.sum(m4 * w5t, axis=-1, keepdims=True) + b5     # (B,1)
            else:
                cur5 = lax.dot_general(m4, w5t, (((1,), (1,)), ((), ())),
                                       preferred_element_type=f32) + b5   # (B,NOUT)
            m5 = bt5 * m5 + cur5                      # broadcasts to (B, H)

            # Side-recording only (off the recurrence critical path).  spikes,
            # membrane mean and spk_23 are all derived in the epilogue.
            out_ref[t, :, 0:H] = m5
            out_ref[t, :, C_CUR:C_CUR + NOUT] = cur5
            acc = acc + spk2
            return m1, m2, m3, m4, m5, acc

        carry0 = (zeros_bh, zeros_bh, zeros_bh, zeros_bh, zeros_bh, zeros_bh)
        *_, acc = lax.fori_loop(0, T, step, carry0, unroll=min(T, 8))

        # ---- epilogue: vectorized post-processing, single output slab ---------
        m5_all = out_ref[:, :, 0:H]                                  # (T, B, H)
        out_ref[:, :, 0:H] = (m5_all - th5 > 0).astype(f32)          # spikes
        out_ref[:, :, C_MEM:C_MEM + 1] = (
            jnp.sum(m5_all, axis=-1, keepdims=True) * inv_h)         # mem mean
        s = jnp.sum(acc, axis=-1, keepdims=True)                     # (B, 1)
        s = jnp.sum(s, axis=0, keepdims=True) * inv_tbh              # (1, 1)
        out_ref[0, 0:1, C_S23:C_S23 + 1] = s                         # spk_23

    return kernel


def lif_forward(x, params):
    """params: flat list [w1,b1,bt1,th1, w2,b2,bt2,th2, ..., w5,b5,bt5,th5],
    with weights in (in_features, out_features) layout."""
    (w1, b1, bt1, th1, w2, b2, bt2, th2, w3, b3, bt3, th3,
     w4, b4, bt4, th4, w5, b5, bt5, th5) = params
    del th4  # provably unused by the reference forward -> never shipped to VMEM
    T, B, _ = x.shape
    H = w2.shape[0]
    NOUT = w5.shape[1]
    assert NOUT <= H, "packing assumes num_output <= hidden"

    f32 = jnp.float32
    OUT_LANES = ((H + NOUT + 2 + 127) // 128) * 128   # lane-dense output slab

    # Pack the fifteen small (1,H)-ish params into one array (one DMA).
    b5_pad = jnp.zeros((1, H), f32).at[:, :NOUT].set(b5.astype(f32))
    packed = jnp.concatenate(
        [w1.reshape(1, H), b1.reshape(1, H), bt1.reshape(1, H), th1.reshape(1, H),
         b2.reshape(1, H), bt2.reshape(1, H), th2.reshape(1, H),
         b3.reshape(1, H), bt3.reshape(1, H), th3.reshape(1, H),
         b4.reshape(1, H), bt4.reshape(1, H),
         bt5.reshape(1, H), th5.reshape(1, H),
         b5_pad, jnp.transpose(w5)],                    # w5^T: (NOUT, H)
        axis=0).astype(f32)                             # (15 + NOUT, H)
    wstack = jnp.stack([w2, w3, w4], axis=0).astype(f32)  # (3, H, H)

    kernel = _make_kernel(T, B, H, NOUT, OUT_LANES)
    out = pl.pallas_call(
        kernel,
        out_shape=jax.ShapeDtypeStruct((T, B, OUT_LANES), f32),
        in_specs=[pl.BlockSpec(memory_space=pltpu.MemorySpace.VMEM)] * 3,
        out_specs=pl.BlockSpec(memory_space=pltpu.MemorySpace.VMEM),
        scratch_shapes=[pltpu.VMEM((T, B, H), f32)],     # hoisted layer-1 currents
    )(x.astype(f32), packed, wstack)

    C_CUR = H
    C_MEM = H + NOUT
    C_S23 = H + NOUT + 1
    return {
        "current": out[:, :, C_CUR:C_CUR + NOUT],
        "membrane_potential": out[:, :, C_MEM:C_MEM + 1],
        "spikes": out[:, :, 0:H],
        "spk_23": out[0, 0, C_S23],
    }


def init_params(key, hidden, num_output):
    """Deterministic torch.nn.Linear-style init; betas/thresholds fixed at 0.1."""
    beta, thr = 0.1, 0.1

    def linear(k, fan_in, fan_out):
        bound = 1.0 / np.sqrt(fan_in)
        kw, kb = jax.random.split(k)
        w = jax.random.uniform(kw, (fan_in, fan_out), jnp.float32, -bound, bound)
        b = jax.random.uniform(kb, (1, fan_out), jnp.float32, -bound, bound)
        return w, b

    ks = jax.random.split(key, 5)
    w1, b1 = linear(ks[0], 1, hidden)
    w2, b2 = linear(ks[1], hidden, hidden)
    w3, b3 = linear(ks[2], hidden, hidden)
    w4, b4 = linear(ks[3], hidden, hidden)
    w5, b5 = linear(ks[4], hidden, num_output)

    bt = jnp.full((1, hidden), beta, jnp.float32)
    th = jnp.full((1, hidden), thr, jnp.float32)

    return [w1, b1, bt, th,
            w2, b2, bt, th,
            w3, b3, bt, th,
            w4, b4, bt, th,
            w5, b5, bt, th]


def reference_forward(x, params):
    """Pure-JAX mirror of the PyTorch forward (for validation)."""
    (w1, b1, bt1, th1, w2, b2, bt2, th2, w3, b3, bt3, th3,
     w4, b4, bt4, th4, w5, b5, bt5, th5) = params
    T, B, _ = x.shape
    H = w2.shape[0]

    def leaky(cur, mem, beta, thr, subtract):
        beta = jnp.clip(beta, 0.0, 1.0)
        if subtract:
            rst = (mem - thr > 0).astype(jnp.float32)
            mem = beta * mem + cur - rst * thr
        else:
            mem = beta * mem + cur
        spk = (mem - thr > 0).astype(jnp.float32)
        return spk, mem

    m1 = m2 = m3 = m4 = jnp.zeros((B, H), jnp.float32)
    m5 = jnp.zeros((B, H), jnp.float32)
    curs, mems, spks, s2s = [], [], [], []
    for t in range(T):
        xt = x[t]
        c1 = xt @ w1 + b1; s1, m1 = leaky(c1, m1, bt1, th1, True)
        c2 = s1 @ w2 + b2; s2, m2 = leaky(c2, m2, bt2, th2, True)
        c3 = s2 @ w3 + b3; s3, m3 = leaky(c3, m3, bt3, th3, True)
        c4 = m3 @ w4 + b4; s4, m4 = leaky(c4, m4, bt4, th4, False)
        c5 = m4 @ w5 + b5; s5, m5 = leaky(c5, m5, bt5, th5, False)
        curs.append(c5)
        mems.append(jnp.mean(m5, axis=-1, keepdims=True))
        spks.append(s5)
        s2s.append(s2)
    return {
        "current": jnp.stack(curs, 0),
        "membrane_potential": jnp.stack(mems, 0),
        "spikes": jnp.stack(spks, 0),
        "spk_23": jnp.mean(jnp.stack(s2s, 0)),
    }


if __name__ == "__main__":
    TIMESTEPS, BATCH, HIDDEN, NUM_OUTPUT = 8, 2, 32, 1

    key = jax.random.PRNGKey(0)
    kx, kp = jax.random.split(key)
    x = jax.random.normal(kx, (TIMESTEPS, BATCH, 1), jnp.float32)
    params = init_params(kp, HIDDEN, NUM_OUTPUT)

    out = jax.block_until_ready(lif_forward(x, params))
    ref = jax.block_until_ready(reference_forward(x, params))

    assert out["current"].shape == (TIMESTEPS, BATCH, NUM_OUTPUT)
    assert out["membrane_potential"].shape == (TIMESTEPS, BATCH, 1)
    assert out["spikes"].shape == (TIMESTEPS, BATCH, HIDDEN)
    assert out["spk_23"].shape == ()

    np.testing.assert_allclose(np.asarray(out["current"]),
                               np.asarray(ref["current"]), rtol=1e-4, atol=1e-4)
    np.testing.assert_allclose(np.asarray(out["membrane_potential"]),
                               np.asarray(ref["membrane_potential"]), rtol=1e-4, atol=1e-4)
    np.testing.assert_allclose(np.asarray(out["spikes"]),
                               np.asarray(ref["spikes"]), rtol=1e-4, atol=1e-4)
    np.testing.assert_allclose(np.asarray(out["spk_23"]),
                               np.asarray(ref["spk_23"]), rtol=1e-4, atol=1e-4)

    print("KERNEL_OK")
</pallas_src>

<mosaic_0001>
module attributes {stable_mosaic.version = 11 : i64} {
  func.func @kernel(%arg0: memref<8x2x1xf32, #tpu.memory_space<vmem>>, %arg1: memref<16x32xf32, #tpu.memory_space<vmem>>, %arg2: memref<3x32x32xf32, #tpu.memory_space<vmem>>, %arg3: memref<8x2x128xf32, #tpu.memory_space<vmem>>, %arg4: memref<8x2x32xf32, #tpu.memory_space<vmem>>) attributes {dimension_semantics = [], scalar_prefetch = 0 : i64, scratch_operands = 1 : i64, tpu.core_type = #tpu.core_type<tc>} {
    %c0 = arith.constant 0 : index
    %c0_0 = arith.constant 0 : index
    %0 = vector.load %arg1[%c0, %c0_0] : memref<16x32xf32, #tpu.memory_space<vmem>>, vector<1x32xf32>
    %c1 = arith.constant 1 : index
    %c0_1 = arith.constant 0 : index
    %1 = vector.load %arg1[%c1, %c0_1] : memref<16x32xf32, #tpu.memory_space<vmem>>, vector<1x32xf32>
    %c2 = arith.constant 2 : index
    %c0_2 = arith.constant 0 : index
    %2 = vector.load %arg1[%c2, %c0_2] : memref<16x32xf32, #tpu.memory_space<vmem>>, vector<1x32xf32>
    %cst = arith.constant 0.000000e+00 : f32
    %cst_3 = arith.constant 1.000000e+00 : f32
    %3 = vector.broadcast %cst : f32 to vector<1x32xf32>
    %4 = arith.maximumf %3, %2 : vector<1x32xf32>
    %5 = vector.broadcast %cst_3 : f32 to vector<1x32xf32>
    %6 = arith.minimumf %5, %4 : vector<1x32xf32>
    %c3 = arith.constant 3 : index
    %c0_4 = arith.constant 0 : index
    %7 = vector.load %arg1[%c3, %c0_4] : memref<16x32xf32, #tpu.memory_space<vmem>>, vector<1x32xf32>
    %c4 = arith.constant 4 : index
    %c0_5 = arith.constant 0 : index
    %8 = vector.load %arg1[%c4, %c0_5] : memref<16x32xf32, #tpu.memory_space<vmem>>, vector<1x32xf32>
    %c5 = arith.constant 5 : index
    %c0_6 = arith.constant 0 : index
    %9 = vector.load %arg1[%c5, %c0_6] : memref<16x32xf32, #tpu.memory_space<vmem>>, vector<1x32xf32>
    %cst_7 = arith.constant 0.000000e+00 : f32
    %cst_8 = arith.constant 1.000000e+00 : f32
    %10 = vector.broadcast %cst_7 : f32 to vector<1x32xf32>
    %11 = arith.maximumf %10, %9 : vector<1x32xf32>
    %12 = vector.broadcast %cst_8 : f32 to vector<1x32xf32>
    %13 = arith.minimumf %12, %11 : vector<1x32xf32>
    %c6 = arith.constant 6 : index
    %c0_9 = arith.constant 0 : index
    %14 = vector.load %arg1[%c6, %c0_9] : memref<16x32xf32, #tpu.memory_space<vmem>>, vector<1x32xf32>
    %c7 = arith.constant 7 : index
    %c0_10 = arith.constant 0 : index
    %15 = vector.load %arg1[%c7, %c0_10] : memref<16x32xf32, #tpu.memory_space<vmem>>, vector<1x32xf32>
    %c8 = arith.constant 8 : index
    %c0_11 = arith.constant 0 : index
    %16 = vector.load %arg1[%c8, %c0_11] : memref<16x32xf32, #tpu.memory_space<vmem>>, vector<1x32xf32>
    %cst_12 = arith.constant 0.000000e+00 : f32
    %cst_13 = arith.constant 1.000000e+00 : f32
    %17 = vector.broadcast %cst_12 : f32 to vector<1x32xf32>
    %18 = arith.maximumf %17, %16 : vector<1x32xf32>
    %19 = vector.broadcast %cst_13 : f32 to vector<1x32xf32>
    %20 = arith.minimumf %19, %18 : vector<1x32xf32>
    %c9 = arith.constant 9 : index
    %c0_14 = arith.constant 0 : index
    %21 = vector.load %arg1[%c9, %c0_14] : memref<16x32xf32, #tpu.memory_space<vmem>>, vector<1x32xf32>
    %c10 = arith.constant 10 : index
    %c0_15 = arith.constant 0 : index
    %22 = vector.load %arg1[%c10, %c0_15] : memref<16x32xf32, #tpu.memory_space<vmem>>, vector<1x32xf32>
    %c11 = arith.constant 11 : index
    %c0_16 = arith.constant 0 : index
    %23 = vector.load %arg1[%c11, %c0_16] : memref<16x32xf32, #tpu.memory_space<vmem>>, vector<1x32xf32>
    %cst_17 = arith.constant 0.000000e+00 : f32
    %cst_18 = arith.constant 1.000000e+00 : f32
    %24 = vector.broadcast %cst_17 : f32 to vector<1x32xf32>
    %25 = arith.maximumf %24, %23 : vector<1x32xf32>
    %26 = vector.broadcast %cst_18 : f32 to vector<1x32xf32>
    %27 = arith.minimumf %26, %25 : vector<1x32xf32>
    %c12 = arith.constant 12 : index
    %c0_19 = arith.constant 0 : index
    %28 = vector.load %arg1[%c12, %c0_19] : memref<16x32xf32, #tpu.memory_space<vmem>>, vector<1x32xf32>
    %cst_20 = arith.constant 0.000000e+00 : f32
    %cst_21 = arith.constant 1.000000e+00 : f32
    %29 = vector.broadcast %cst_20 : f32 to vector<1x32xf32>
    %30 = arith.maximumf %29, %28 : vector<1x32xf32>
    %31 = vector.broadcast %cst_21 : f32 to vector<1x32xf32>
    %32 = arith.minimumf %31, %30 : vector<1x32xf32>
    %c13 = arith.constant 13 : index
    %c0_22 = arith.constant 0 : index
    %33 = vector.load %arg1[%c13, %c0_22] : memref<16x32xf32, #tpu.memory_space<vmem>>, vector<1x32xf32>
    %c14 = arith.constant 14 : index
    %c0_23 = arith.constant 0 : index
    %34 = vector.load %arg1[%c14, %c0_23] : memref<16x32xf32, #tpu.memory_space<vmem>>, vector<1x1xf32>
    %c15 = arith.constant 15 : index
    %c0_24 = arith.constant 0 : index
    %35 = vector.load %arg1[%c15, %c0_24] : memref<16x32xf32, #tpu.memory_space<vmem>>, vector<1x32xf32>
    %c0_25 = arith.constant 0 : index
    %c0_26 = arith.constant 0 : index
    %c0_27 = arith.constant 0 : index
    %36 = vector.load %arg2[%c0_25, %c0_26, %c0_27] : memref<3x32x32xf32, #tpu.memory_space<vmem>>, vector<1x32x32xf32>
    %37 = vector.shape_cast %36 : vector<1x32x32xf32> to vector<32x32xf32>
    %c1_28 = arith.constant 1 : index
    %c0_29 = arith.constant 0 : index
    %c0_30 = arith.constant 0 : index
    %38 = vector.load %arg2[%c1_28, %c0_29, %c0_30] : memref<3x32x32xf32, #tpu.memory_space<vmem>>, vector<1x32x32xf32>
    %39 = vector.shape_cast %38 : vector<1x32x32xf32> to vector<32x32xf32>
    %c2_31 = arith.constant 2 : index
    %c0_32 = arith.constant 0 : index
    %c0_33 = arith.constant 0 : index
    %40 = vector.load %arg2[%c2_31, %c0_32, %c0_33] : memref<3x32x32xf32, #tpu.memory_space<vmem>>, vector<1x32x32xf32>
    %41 = vector.shape_cast %40 : vector<1x32x32xf32> to vector<32x32xf32>
    %c0_34 = arith.constant 0 : index
    %c0_35 = arith.constant 0 : index
    %c0_36 = arith.constant 0 : index
    %42 = vector.load %arg0[%c0_34, %c0_35, %c0_36] : memref<8x2x1xf32, #tpu.memory_space<vmem>>, vector<8x2x1xf32>
    %43 = vector.shape_cast %0 : vector<1x32xf32> to vector<1x1x32xf32>
    %44 = vector.broadcast %42 : vector<8x2x1xf32> to vector<8x2x32xf32>
    %45 = vector.broadcast %43 : vector<1x1x32xf32> to vector<8x2x32xf32>
    %46 = arith.mulf %44, %45 : vector<8x2x32xf32>
    %47 = vector.shape_cast %1 : vector<1x32xf32> to vector<1x1x32xf32>
    %48 = vector.broadcast %47 : vector<1x1x32xf32> to vector<8x2x32xf32>
    %49 = arith.addf %46, %48 : vector<8x2x32xf32>
    %c0_37 = arith.constant 0 : index
    %c0_38 = arith.constant 0 : index
    %c0_39 = arith.constant 0 : index
    %50 = vector.load %arg4[%c0_37, %c0_38, %c0_39] : memref<8x2x32xf32, #tpu.memory_space<vmem>>, vector<8x2x32xf32>
    tpu.vector_store %arg4[%c0_37, %c0_38, %c0_39], %49 {strides = array<i32>} : memref<8x2x32xf32, #tpu.memory_space<vmem>>, vector<8x2x32xf32>,
    %cst_40 = arith.constant 0.000000e+00 : f32
    %51 = vector.broadcast %cst_40 : f32 to vector<2x32xf32>
    %c0_i32 = arith.constant 0 : i32
    %52 = arith.index_cast %c0_i32 : i32 to index
    %c0_41 = arith.constant 0 : index
    %c0_42 = arith.constant 0 : index
    %53 = vector.load %arg4[%52, %c0_41, %c0_42] : memref<8x2x32xf32, #tpu.memory_space<vmem>>, vector<1x2x32xf32>
    %54 = vector.shape_cast %53 : vector<1x2x32xf32> to vector<2x32xf32>
    %55 = vector.broadcast %7 : vector<1x32xf32> to vector<2x32xf32>
    %56 = arith.subf %51, %55 : vector<2x32xf32>
    %cst_43 = arith.constant 0.000000e+00 : f32
    %57 = vector.broadcast %cst_43 : f32 to vector<2x32xf32>
    %58 = arith.cmpf ogt, %56, %57 : vector<2x32xf32>
    %59 = arith.extui %58 : vector<2x32xi1> to vector<2x32xi32>
    %60 = arith.sitofp %59 : vector<2x32xi32> to vector<2x32xf32>
    %61 = vector.broadcast %6 : vector<1x32xf32> to vector<2x32xf32>
    %62 = arith.mulf %61, %51 : vector<2x32xf32>
    %63 = arith.addf %62, %54 : vector<2x32xf32>
    %64 = vector.broadcast %7 : vector<1x32xf32> to vector<2x32xf32>
    %65 = arith.mulf %60, %64 : vector<2x32xf32>
    %66 = arith.subf %63, %65 : vector<2x32xf32>
    %67 = vector.broadcast %7 : vector<1x32xf32> to vector<2x32xf32>
    %68 = arith.subf %66, %67 : vector<2x32xf32>
    %cst_44 = arith.constant 0.000000e+00 : f32
    %69 = vector.broadcast %cst_44 : f32 to vector<2x32xf32>
    %70 = arith.cmpf ogt, %68, %69 : vector<2x32xf32>
    %71 = arith.extui %70 : vector<2x32xi1> to vector<2x32xi32>
    %72 = arith.sitofp %71 : vector<2x32xi32> to vector<2x32xf32>
    %cst_45 = arith.constant dense<0.000000e+00> : vector<2x32xf32>
    %73 = tpu.matmul %72, %37, %cst_45 {dimension_numbers = #tpu.dot_dimension_numbers<[1], [0], [0], [1], [0, 0, 1, 1], [], []>} : vector<2x32xf32>, vector<32x32xf32>, vector<2x32xf32> -> vector<2x32xf32>
    %74 = vector.broadcast %8 : vector<1x32xf32> to vector<2x32xf32>
    %75 = arith.addf %73, %74 : vector<2x32xf32>
    %76 = vector.broadcast %14 : vector<1x32xf32> to vector<2x32xf32>
    %77 = arith.subf %51, %76 : vector<2x32xf32>
    %cst_46 = arith.constant 0.000000e+00 : f32
    %78 = vector.broadcast %cst_46 : f32 to vector<2x32xf32>
    %79 = arith.cmpf ogt, %77, %78 : vector<2x32xf32>
    %80 = arith.extui %79 : vector<2x32xi1> to vector<2x32xi32>
    %81 = arith.sitofp %80 : vector<2x32xi32> to vector<2x32xf32>
    %82 = vector.broadcast %13 : vector<1x32xf32> to vector<2x32xf32>
    %83 = arith.mulf %82, %51 : vector<2x32xf32>
    %84 = arith.addf %83, %75 : vector<2x32xf32>
    %85 = vector.broadcast %14 : vector<1x32xf32> to vector<2x32xf32>
    %86 = arith.mulf %81, %85 : vector<2x32xf32>
    %87 = arith.subf %84, %86 : vector<2x32xf32>
    %88 = vector.broadcast %14 : vector<1x32xf32> to vector<2x32xf32>
    %89 = arith.subf %87, %88 : vector<2x32xf32>
    %cst_47 = arith.constant 0.000000e+00 : f32
    %90 = vector.broadcast %cst_47 : f32 to vector<2x32xf32>
    %91 = arith.cmpf ogt, %89, %90 : vector<2x32xf32>
    %92 = arith.extui %91 : vector<2x32xi1> to vector<2x32xi32>
    %93 = arith.sitofp %92 : vector<2x32xi32> to vector<2x32xf32>
    %cst_48 = arith.constant dense<0.000000e+00> : vector<2x32xf32>
    %94 = tpu.matmul %93, %39, %cst_48 {dimension_numbers = #tpu.dot_dimension_numbers<[1], [0], [0], [1], [0, 0, 1, 1], [], []>} : vector<2x32xf32>, vector<32x32xf32>, vector<2x32xf32> -> vector<2x32xf32>
    %95 = vector.broadcast %15 : vector<1x32xf32> to vector<2x32xf32>
    %96 = arith.addf %94, %95 : vector<2x32xf32>
    %97 = vector.broadcast %21 : vector<1x32xf32> to vector<2x32xf32>
    %98 = arith.subf %51, %97 : vector<2x32xf32>
    %cst_49 = arith.constant 0.000000e+00 : f32
    %99 = vector.broadcast %cst_49 : f32 to vector<2x32xf32>
    %100 = arith.cmpf ogt, %98, %99 : vector<2x32xf32>
    %101 = arith.extui %100 : vector<2x32xi1> to vector<2x32xi32>
    %102 = arith.sitofp %101 : vector<2x32xi32> to vector<2x32xf32>
    %103 = vector.broadcast %20 : vector<1x32xf32> to vector<2x32xf32>
    %104 = arith.mulf %103, %51 : vector<2x32xf32>
    %105 = arith.addf %104, %96 : vector<2x32xf32>
    %106 = vector.broadcast %21 : vector<1x32xf32> to vector<2x32xf32>
    %107 = arith.mulf %102, %106 : vector<2x32xf32>
    %108 = arith.subf %105, %107 : vector<2x32xf32>
    %cst_50 = arith.constant dense<0.000000e+00> : vector<2x32xf32>
    %109 = tpu.matmul %108, %41, %cst_50 {dimension_numbers = #tpu.dot_dimension_numbers<[1], [0], [0], [1], [0, 0, 1, 1], [], []>} : vector<2x32xf32>, vector<32x32xf32>, vector<2x32xf32> -> vector<2x32xf32>
    %110 = vector.broadcast %22 : vector<1x32xf32> to vector<2x32xf32>
    %111 = arith.addf %109, %110 : vector<2x32xf32>
    %112 = vector.broadcast %27 : vector<1x32xf32> to vector<2x32xf32>
    %113 = arith.mulf %112, %51 : vector<2x32xf32>
    %114 = arith.addf %113, %111 : vector<2x32xf32>
    %115 = vector.broadcast %35 : vector<1x32xf32> to vector<2x32xf32>
    %116 = arith.mulf %114, %115 : vector<2x32xf32>
    %cst_51 = arith.constant dense<0.000000e+00> : vector<2xf32>
    %117 = vector.multi_reduction <add>, %116, %cst_51 [1] : vector<2x32xf32> to vector<2xf32>
    %118 = vector.shape_cast %117 : vector<2xf32> to vector<2x1xf32>
    %119 = vector.broadcast %34 : vector<1x1xf32> to vector<2x1xf32>
    %120 = arith.addf %118, %119 : vector<2x1xf32>
    %121 = vector.broadcast %32 : vector<1x32xf32> to vector<2x32xf32>
    %122 = arith.mulf %121, %51 : vector<2x32xf32>
    %123 = vector.broadcast %120 : vector<2x1xf32> to vector<2x32xf32>
    %124 = arith.addf %122, %123 : vector<2x32xf32>
    %125 = arith.index_cast %c0_i32 : i32 to index
    %c0_52 = arith.constant 0 : index
    %c0_53 = arith.constant 0 : index
    %126 = vector.load %arg3[%125, %c0_52, %c0_53] : memref<8x2x128xf32, #tpu.memory_space<vmem>>, vector<1x2x32xf32>
    %127 = vector.shape_cast %126 : vector<1x2x32xf32> to vector<2x32xf32>
    %128 = vector.shape_cast %124 : vector<2x32xf32> to vector<1x2x32xf32>
    tpu.vector_store %arg3[%125, %c0_52, %c0_53], %128 {strides = array<i32>} : memref<8x2x128xf32, #tpu.memory_space<vmem>>, vector<1x2x32xf32>,
    %129 = arith.index_cast %c0_i32 : i32 to index
    %c0_54 = arith.constant 0 : index
    %c32 = arith.constant 32 : index
    %130 = vector.load %arg3[%129, %c0_54, %c32] : memref<8x2x128xf32, #tpu.memory_space<vmem>>, vector<1x2x1xf32>
    %131 = vector.shape_cast %130 : vector<1x2x1xf32> to vector<2x1xf32>
    %132 = vector.shape_cast %120 : vector<2x1xf32> to vector<1x2x1xf32>
    tpu.vector_store %arg3[%129, %c0_54, %c32], %132 {strides = array<i32>} : memref<8x2x128xf32, #tpu.memory_space<vmem>>, vector<1x2x1xf32>,
    %133 = arith.addf %51, %93 : vector<2x32xf32>
    %c1_i32 = arith.constant 1 : i32
    %134 = arith.index_cast %c1_i32 : i32 to index
    %c0_55 = arith.constant 0 : index
    %c0_56 = arith.constant 0 : index
    %135 = vector.load %arg4[%134, %c0_55, %c0_56] : memref<8x2x32xf32, #tpu.memory_space<vmem>>, vector<1x2x32xf32>
    %136 = vector.shape_cast %135 : vector<1x2x32xf32> to vector<2x32xf32>
    %137 = vector.broadcast %7 : vector<1x32xf32> to vector<2x32xf32>
    %138 = arith.subf %66, %137 : vector<2x32xf32>
    %cst_57 = arith.constant 0.000000e+00 : f32
    %139 = vector.broadcast %cst_57 : f32 to vector<2x32xf32>
    %140 = arith.cmpf ogt, %138, %139 : vector<2x32xf32>
    %141 = arith.extui %140 : vector<2x32xi1> to vector<2x32xi32>
    %142 = arith.sitofp %141 : vector<2x32xi32> to vector<2x32xf32>
    %143 = vector.broadcast %6 : vector<1x32xf32> to vector<2x32xf32>
    %144 = arith.mulf %143, %66 : vector<2x32xf32>
    %145 = arith.addf %144, %136 : vector<2x32xf32>
    %146 = vector.broadcast %7 : vector<1x32xf32> to vector<2x32xf32>
    %147 = arith.mulf %142, %146 : vector<2x32xf32>
    %148 = arith.subf %145, %147 : vector<2x32xf32>
    %149 = vector.broadcast %7 : vector<1x32xf32> to vector<2x32xf32>
    %150 = arith.subf %148, %149 : vector<2x32xf32>
    %cst_58 = arith.constant 0.000000e+00 : f32
    %151 = vector.broadcast %cst_58 : f32 to vector<2x32xf32>
    %152 = arith.cmpf ogt, %150, %151 : vector<2x32xf32>
    %153 = arith.extui %152 : vector<2x32xi1> to vector<2x32xi32>
    %154 = arith.sitofp %153 : vector<2x32xi32> to vector<2x32xf32>
    %cst_59 = arith.constant dense<0.000000e+00> : vector<2x32xf32>
    %155 = tpu.matmul %154, %37, %cst_59 {dimension_numbers = #tpu.dot_dimension_numbers<[1], [0], [0], [1], [0, 0, 1, 1], [], []>} : vector<2x32xf32>, vector<32x32xf32>, vector<2x32xf32> -> vector<2x32xf32>
    %156 = vector.broadcast %8 : vector<1x32xf32> to vector<2x32xf32>
    %157 = arith.addf %155, %156 : vector<2x32xf32>
    %158 = vector.broadcast %14 : vector<1x32xf32> to vector<2x32xf32>
    %159 = arith.subf %87, %158 : vector<2x32xf32>
    %cst_60 = arith.constant 0.000000e+00 : f32
    %160 = vector.broadcast %cst_60 : f32 to vector<2x32xf32>
    %161 = arith.cmpf ogt, %159, %160 : vector<2x32xf32>
    %162 = arith.extui %161 : vector<2x32xi1> to vector<2x32xi32>
    %163 = arith.sitofp %162 : vector<2x32xi32> to vector<2x32xf32>
    %164 = vector.broadcast %13 : vector<1x32xf32> to vector<2x32xf32>
    %165 = arith.mulf %164, %87 : vector<2x32xf32>
    %166 = arith.addf %165, %157 : vector<2x32xf32>
    %167 = vector.broadcast %14 : vector<1x32xf32> to vector<2x32xf32>
    %168 = arith.mulf %163, %167 : vector<2x32xf32>
    %169 = arith.subf %166, %168 : vector<2x32xf32>
    %170 = vector.broadcast %14 : vector<1x32xf32> to vector<2x32xf32>
    %171 = arith.subf %169, %170 : vector<2x32xf32>
    %cst_61 = arith.constant 0.000000e+00 : f32
    %172 = vector.broadcast %cst_61 : f32 to vector<2x32xf32>
    %173 = arith.cmpf ogt, %171, %172 : vector<2x32xf32>
    %174 = arith.extui %173 : vector<2x32xi1> to vector<2x32xi32>
    %175 = arith.sitofp %174 : vector<2x32xi32> to vector<2x32xf32>
    %cst_62 = arith.constant dense<0.000000e+00> : vector<2x32xf32>
    %176 = tpu.matmul %175, %39, %cst_62 {dimension_numbers = #tpu.dot_dimension_numbers<[1], [0], [0], [1], [0, 0, 1, 1], [], []>} : vector<2x32xf32>, vector<32x32xf32>, vector<2x32xf32> -> vector<2x32xf32>
    %177 = vector.broadcast %15 : vector<1x32xf32> to vector<2x32xf32>
    %178 = arith.addf %176, %177 : vector<2x32xf32>
    %179 = vector.broadcast %21 : vector<1x32xf32> to vector<2x32xf32>
    %180 = arith.subf %108, %179 : vector<2x32xf32>
    %cst_63 = arith.constant 0.000000e+00 : f32
    %181 = vector.broadcast %cst_63 : f32 to vector<2x32xf32>
    %182 = arith.cmpf ogt, %180, %181 : vector<2x32xf32>
    %183 = arith.extui %182 : vector<2x32xi1> to vector<2x32xi32>
    %184 = arith.sitofp %183 : vector<2x32xi32> to vector<2x32xf32>
    %185 = vector.broadcast %20 : vector<1x32xf32> to vector<2x32xf32>
    %186 = arith.mulf %185, %108 : vector<2x32xf32>
    %187 = arith.addf %186, %178 : vector<2x32xf32>
    %188 = vector.broadcast %21 : vector<1x32xf32> to vector<2x32xf32>
    %189 = arith.mulf %184, %188 : vector<2x32xf32>
    %190 = arith.subf %187, %189 : vector<2x32xf32>
    %cst_64 = arith.constant dense<0.000000e+00> : vector<2x32xf32>
    %191 = tpu.matmul %190, %41, %cst_64 {dimension_numbers = #tpu.dot_dimension_numbers<[1], [0], [0], [1], [0, 0, 1, 1], [], []>} : vector<2x32xf32>, vector<32x32xf32>, vector<2x32xf32> -> vector<2x32xf32>
    %192 = vector.broadcast %22 : vector<1x32xf32> to vector<2x32xf32>
    %193 = arith.addf %191, %192 : vector<2x32xf32>
    %194 = vector.broadcast %27 : vector<1x32xf32> to vector<2x32xf32>
    %195 = arith.mulf %194, %114 : vector<2x32xf32>
    %196 = arith.addf %195, %193 : vector<2x32xf32>
    %197 = vector.broadcast %35 : vector<1x32xf32> to vector<2x32xf32>
    %198 = arith.mulf %196, %197 : vector<2x32xf32>
    %cst_65 = arith.constant dense<0.000000e+00> : vector<2xf32>
    %199 = vector.multi_reduction <add>, %198, %cst_65 [1] : vector<2x32xf32> to vector<2xf32>
    %200 = vector.shape_cast %199 : vector<2xf32> to vector<2x1xf32>
    %201 = vector.broadcast %34 : vector<1x1xf32> to vector<2x1xf32>
    %202 = arith.addf %200, %201 : vector<2x1xf32>
    %203 = vector.broadcast %32 : vector<1x32xf32> to vector<2x32xf32>
    %204 = arith.mulf %203, %124 : vector<2x32xf32>
    %205 = vector.broadcast %202 : vector<2x1xf32> to vector<2x32xf32>
    %206 = arith.addf %204, %205 : vector<2x32xf32>
    %207 = arith.index_cast %c1_i32 : i32 to index
    %c0_66 = arith.constant 0 : index
    %c0_67 = arith.constant 0 : index
    %208 = vector.load %arg3[%207, %c0_66, %c0_67] : memref<8x2x128xf32, #tpu.memory_space<vmem>>, vector<1x2x32xf32>
    %209 = vector.shape_cast %208 : vector<1x2x32xf32> to vector<2x32xf32>
    %210 = vector.shape_cast %206 : vector<2x32xf32> to vector<1x2x32xf32>
    tpu.vector_store %arg3[%207, %c0_66, %c0_67], %210 {strides = array<i32>} : memref<8x2x128xf32, #tpu.memory_space<vmem>>, vector<1x2x32xf32>,
    %211 = arith.index_cast %c1_i32 : i32 to index
    %c0_68 = arith.constant 0 : index
    %c32_69 = arith.constant 32 : index
    %212 = vector.load %arg3[%211, %c0_68, %c32_69] : memref<8x2x128xf32, #tpu.memory_space<vmem>>, vector<1x2x1xf32>
    %213 = vector.shape_cast %212 : vector<1x2x1xf32> to vector<2x1xf32>
    %214 = vector.shape_cast %202 : vector<2x1xf32> to vector<1x2x1xf32>
    tpu.vector_store %arg3[%211, %c0_68, %c32_69], %214 {strides = array<i32>} : memref<8x2x128xf32, #tpu.memory_space<vmem>>, vector<1x2x1xf32>,
    %215 = arith.addf %133, %175 : vector<2x32xf32>
    %c2_i32 = arith.constant 2 : i32
    %216 = arith.index_cast %c2_i32 : i32 to index
    %c0_70 = arith.constant 0 : index
    %c0_71 = arith.constant 0 : index
    %217 = vector.load %arg4[%216, %c0_70, %c0_71] : memref<8x2x32xf32, #tpu.memory_space<vmem>>, vector<1x2x32xf32>
    %218 = vector.shape_cast %217 : vector<1x2x32xf32> to vector<2x32xf32>
    %219 = vector.broadcast %7 : vector<1x32xf32> to vector<2x32xf32>
    %220 = arith.subf %148, %219 : vector<2x32xf32>
    %cst_72 = arith.constant 0.000000e+00 : f32
    %221 = vector.broadcast %cst_72 : f32 to vector<2x32xf32>
    %222 = arith.cmpf ogt, %220, %221 : vector<2x32xf32>
    %223 = arith.extui %222 : vector<2x32xi1> to vector<2x32xi32>
    %224 = arith.sitofp %223 : vector<2x32xi32> to vector<2x32xf32>
    %225 = vector.broadcast %6 : vector<1x32xf32> to vector<2x32xf32>
    %226 = arith.mulf %225, %148 : vector<2x32xf32>
    %227 = arith.addf %226, %218 : vector<2x32xf32>
    %228 = vector.broadcast %7 : vector<1x32xf32> to vector<2x32xf32>
    %229 = arith.mulf %224, %228 : vector<2x32xf32>
    %230 = arith.subf %227, %229 : vector<2x32xf32>
    %231 = vector.broadcast %7 : vector<1x32xf32> to vector<2x32xf32>
    %232 = arith.subf %230, %231 : vector<2x32xf32>
    %cst_73 = arith.constant 0.000000e+00 : f32
    %233 = vector.broadcast %cst_73 : f32 to vector<2x32xf32>
    %234 = arith.cmpf ogt, %232, %233 : vector<2x32xf32>
    %235 = arith.extui %234 : vector<2x32xi1> to vector<2x32xi32>
    %236 = arith.sitofp %235 : vector<2x32xi32> to vector<2x32xf32>
    %cst_74 = arith.constant dense<0.000000e+00> : vector<2x32xf32>
    %237 = tpu.matmul %236, %37, %cst_74 {dimension_numbers = #tpu.dot_dimension_numbers<[1], [0], [0], [1], [0, 0, 1, 1], [], []>} : vector<2x32xf32>, vector<32x32xf32>, vector<2x32xf32> -> vector<2x32xf32>
    %238 = vector.broadcast %8 : vector<1x32xf32> to vector<2x32xf32>
    %239 = arith.addf %237, %238 : vector<2x32xf32>
    %240 = vector.broadcast %14 : vector<1x32xf32> to vector<2x32xf32>
    %241 = arith.subf %169, %240 : vector<2x32xf32>
    %cst_75 = arith.constant 0.000000e+00 : f32
    %242 = vector.broadcast %cst_75 : f32 to vector<2x32xf32>
    %243 = arith.cmpf ogt, %241, %242 : vector<2x32xf32>
    %244 = arith.extui %243 : vector<2x32xi1> to vector<2x32xi32>
    %245 = arith.sitofp %244 : vector<2x32xi32> to vector<2x32xf32>
    %246 = vector.broadcast %13 : vector<1x32xf32> to vector<2x32xf32>
    %247 = arith.mulf %246, %169 : vector<2x32xf32>
    %248 = arith.addf %247, %239 : vector<2x32xf32>
    %249 = vector.broadcast %14 : vector<1x32xf32> to vector<2x32xf32>
    %250 = arith.mulf %245, %249 : vector<2x32xf32>
    %251 = arith.subf %248, %250 : vector<2x32xf32>
    %252 = vector.broadcast %14 : vector<1x32xf32> to vector<2x32xf32>
    %253 = arith.subf %251, %252 : vector<2x32xf32>
    %cst_76 = arith.constant 0.000000e+00 : f32
    %254 = vector.broadcast %cst_76 : f32 to vector<2x32xf32>
    %255 = arith.cmpf ogt, %253, %254 : vector<2x32xf32>
    %256 = arith.extui %255 : vector<2x32xi1> to vector<2x32xi32>
    %257 = arith.sitofp %256 : vector<2x32xi32> to vector<2x32xf32>
    %cst_77 = arith.constant dense<0.000000e+00> : vector<2x32xf32>
    %258 = tpu.matmul %257, %39, %cst_77 {dimension_numbers = #tpu.dot_dimension_numbers<[1], [0], [0], [1], [0, 0, 1, 1], [], []>} : vector<2x32xf32>, vector<32x32xf32>, vector<2x32xf32> -> vector<2x32xf32>
    %259 = vector.broadcast %15 : vector<1x32xf32> to vector<2x32xf32>
    %260 = arith.addf %258, %259 : vector<2x32xf32>
    %261 = vector.broadcast %21 : vector<1x32xf32> to vector<2x32xf32>
    %262 = arith.subf %190, %261 : vector<2x32xf32>
    %cst_78 = arith.constant 0.000000e+00 : f32
    %263 = vector.broadcast %cst_78 : f32 to vector<2x32xf32>
    %264 = arith.cmpf ogt, %262, %263 : vector<2x32xf32>
    %265 = arith.extui %264 : vector<2x32xi1> to vector<2x32xi32>
    %266 = arith.sitofp %265 : vector<2x32xi32> to vector<2x32xf32>
    %267 = vector.broadcast %20 : vector<1x32xf32> to vector<2x32xf32>
    %268 = arith.mulf %267, %190 : vector<2x32xf32>
    %269 = arith.addf %268, %260 : vector<2x32xf32>
    %270 = vector.broadcast %21 : vector<1x32xf32> to vector<2x32xf32>
    %271 = arith.mulf %266, %270 : vector<2x32xf32>
    %272 = arith.subf %269, %271 : vector<2x32xf32>
    %cst_79 = arith.constant dense<0.000000e+00> : vector<2x32xf32>
    %273 = tpu.matmul %272, %41, %cst_79 {dimension_numbers = #tpu.dot_dimension_numbers<[1], [0], [0], [1], [0, 0, 1, 1], [], []>} : vector<2x32xf32>, vector<32x32xf32>, vector<2x32xf32> -> vector<2x32xf32>
    %274 = vector.broadcast %22 : vector<1x32xf32> to vector<2x32xf32>
    %275 = arith.addf %273, %274 : vector<2x32xf32>
    %276 = vector.broadcast %27 : vector<1x32xf32> to vector<2x32xf32>
    %277 = arith.mulf %276, %196 : vector<2x32xf32>
    %278 = arith.addf %277, %275 : vector<2x32xf32>
    %279 = vector.broadcast %35 : vector<1x32xf32> to vector<2x32xf32>
    %280 = arith.mulf %278, %279 : vector<2x32xf32>
    %cst_80 = arith.constant dense<0.000000e+00> : vector<2xf32>
    %281 = vector.multi_reduction <add>, %280, %cst_80 [1] : vector<2x32xf32> to vector<2xf32>
    %282 = vector.shape_cast %281 : vector<2xf32> to vector<2x1xf32>
    %283 = vector.broadcast %34 : vector<1x1xf32> to vector<2x1xf32>
    %284 = arith.addf %282, %283 : vector<2x1xf32>
    %285 = vector.broadcast %32 : vector<1x32xf32> to vector<2x32xf32>
    %286 = arith.mulf %285, %206 : vector<2x32xf32>
    %287 = vector.broadcast %284 : vector<2x1xf32> to vector<2x32xf32>
    %288 = arith.addf %286, %287 : vector<2x32xf32>
    %289 = arith.index_cast %c2_i32 : i32 to index
    %c0_81 = arith.constant 0 : index
    %c0_82 = arith.constant 0 : index
    %290 = vector.load %arg3[%289, %c0_81, %c0_82] : memref<8x2x128xf32, #tpu.memory_space<vmem>>, vector<1x2x32xf32>
    %291 = vector.shape_cast %290 : vector<1x2x32xf32> to vector<2x32xf32>
    %292 = vector.shape_cast %288 : vector<2x32xf32> to vector<1x2x32xf32>
    tpu.vector_store %arg3[%289, %c0_81, %c0_82], %292 {strides = array<i32>} : memref<8x2x128xf32, #tpu.memory_space<vmem>>, vector<1x2x32xf32>,
    %293 = arith.index_cast %c2_i32 : i32 to index
    %c0_83 = arith.constant 0 : index
    %c32_84 = arith.constant 32 : index
    %294 = vector.load %arg3[%293, %c0_83, %c32_84] : memref<8x2x128xf32, #tpu.memory_space<vmem>>, vector<1x2x1xf32>
    %295 = vector.shape_cast %294 : vector<1x2x1xf32> to vector<2x1xf32>
    %296 = vector.shape_cast %284 : vector<2x1xf32> to vector<1x2x1xf32>
    tpu.vector_store %arg3[%293, %c0_83, %c32_84], %296 {strides = array<i32>} : memref<8x2x128xf32, #tpu.memory_space<vmem>>, vector<1x2x1xf32>,
    %297 = arith.addf %215, %257 : vector<2x32xf32>
    %c3_i32 = arith.constant 3 : i32
    %298 = arith.index_cast %c3_i32 : i32 to index
    %c0_85 = arith.constant 0 : index
    %c0_86 = arith.constant 0 : index
    %299 = vector.load %arg4[%298, %c0_85, %c0_86] : memref<8x2x32xf32, #tpu.memory_space<vmem>>, vector<1x2x32xf32>
    %300 = vector.shape_cast %299 : vector<1x2x32xf32> to vector<2x32xf32>
    %301 = vector.broadcast %7 : vector<1x32xf32> to vector<2x32xf32>
    %302 = arith.subf %230, %301 : vector<2x32xf32>
    %cst_87 = arith.constant 0.000000e+00 : f32
    %303 = vector.broadcast %cst_87 : f32 to vector<2x32xf32>
    %304 = arith.cmpf ogt, %302, %303 : vector<2x32xf32>
    %305 = arith.extui %304 : vector<2x32xi1> to vector<2x32xi32>
    %306 = arith.sitofp %305 : vector<2x32xi32> to vector<2x32xf32>
    %307 = vector.broadcast %6 : vector<1x32xf32> to vector<2x32xf32>
    %308 = arith.mulf %307, %230 : vector<2x32xf32>
    %309 = arith.addf %308, %300 : vector<2x32xf32>
    %310 = vector.broadcast %7 : vector<1x32xf32> to vector<2x32xf32>
    %311 = arith.mulf %306, %310 : vector<2x32xf32>
    %312 = arith.subf %309, %311 : vector<2x32xf32>
    %313 = vector.broadcast %7 : vector<1x32xf32> to vector<2x32xf32>
    %314 = arith.subf %312, %313 : vector<2x32xf32>
    %cst_88 = arith.constant 0.000000e+00 : f32
    %315 = vector.broadcast %cst_88 : f32 to vector<2x32xf32>
    %316 = arith.cmpf ogt, %314, %315 : vector<2x32xf32>
    %317 = arith.extui %316 : vector<2x32xi1> to vector<2x32xi32>
    %318 = arith.sitofp %317 : vector<2x32xi32> to vector<2x32xf32>
    %cst_89 = arith.constant dense<0.000000e+00> : vector<2x32xf32>
    %319 = tpu.matmul %318, %37, %cst_89 {dimension_numbers = #tpu.dot_dimension_numbers<[1], [0], [0], [1], [0, 0, 1, 1], [], []>} : vector<2x32xf32>, vector<32x32xf32>, vector<2x32xf32> -> vector<2x32xf32>
    %320 = vector.broadcast %8 : vector<1x32xf32> to vector<2x32xf32>
    %321 = arith.addf %319, %320 : vector<2x32xf32>
    %322 = vector.broadcast %14 : vector<1x32xf32> to vector<2x32xf32>
    %323 = arith.subf %251, %322 : vector<2x32xf32>
    %cst_90 = arith.constant 0.000000e+00 : f32
    %324 = vector.broadcast %cst_90 : f32 to vector<2x32xf32>
    %325 = arith.cmpf ogt, %323, %324 : vector<2x32xf32>
    %326 = arith.extui %325 : vector<2x32xi1> to vector<2x32xi32>
    %327 = arith.sitofp %326 : vector<2x32xi32> to vector<2x32xf32>
    %328 = vector.broadcast %13 : vector<1x32xf32> to vector<2x32xf32>
    %329 = arith.mulf %328, %251 : vector<2x32xf32>
    %330 = arith.addf %329, %321 : vector<2x32xf32>
    %331 = vector.broadcast %14 : vector<1x32xf32> to vector<2x32xf32>
    %332 = arith.mulf %327, %331 : vector<2x32xf32>
    %333 = arith.subf %330, %332 : vector<2x32xf32>
    %334 = vector.broadcast %14 : vector<1x32xf32> to vector<2x32xf32>
    %335 = arith.subf %333, %334 : vector<2x32xf32>
    %cst_91 = arith.constant 0.000000e+00 : f32
    %336 = vector.broadcast %cst_91 : f32 to vector<2x32xf32>
    %337 = arith.cmpf ogt, %335, %336 : vector<2x32xf32>
    %338 = arith.extui %337 : vector<2x32xi1> to vector<2x32xi32>
    %339 = arith.sitofp %338 : vector<2x32xi32> to vector<2x32xf32>
    %cst_92 = arith.constant dense<0.000000e+00> : vector<2x32xf32>
    %340 = tpu.matmul %339, %39, %cst_92 {dimension_numbers = #tpu.dot_dimension_numbers<[1], [0], [0], [1], [0, 0, 1, 1], [], []>} : vector<2x32xf32>, vector<32x32xf32>, vector<2x32xf32> -> vector<2x32xf32>
    %341 = vector.broadcast %15 : vector<1x32xf32> to vector<2x32xf32>
    %342 = arith.addf %340, %341 : vector<2x32xf32>
    %343 = vector.broadcast %21 : vector<1x32xf32> to vector<2x32xf32>
    %344 = arith.subf %272, %343 : vector<2x32xf32>
    %cst_93 = arith.constant 0.000000e+00 : f32
    %345 = vector.broadcast %cst_93 : f32 to vector<2x32xf32>
    %346 = arith.cmpf ogt, %344, %345 : vector<2x32xf32>
    %347 = arith.extui %346 : vector<2x32xi1> to vector<2x32xi32>
    %348 = arith.sitofp %347 : vector<2x32xi32> to vector<2x32xf32>
    %349 = vector.broadcast %20 : vector<1x32xf32> to vector<2x32xf32>
    %350 = arith.mulf %349, %272 : vector<2x32xf32>
    %351 = arith.addf %350, %342 : vector<2x32xf32>
    %352 = vector.broadcast %21 : vector<1x32xf32> to vector<2x32xf32>
    %353 = arith.mulf %348, %352 : vector<2x32xf32>
    %354 = arith.subf %351, %353 : vector<2x32xf32>
    %cst_94 = arith.constant dense<0.000000e+00> : vector<2x32xf32>
    %355 = tpu.matmul %354, %41, %cst_94 {dimension_numbers = #tpu.dot_dimension_numbers<[1], [0], [0], [1], [0, 0, 1, 1], [], []>} : vector<2x32xf32>, vector<32x32xf32>, vector<2x32xf32> -> vector<2x32xf32>
    %356 = vector.broadcast %22 : vector<1x32xf32> to vector<2x32xf32>
    %357 = arith.addf %355, %356 : vector<2x32xf32>
    %358 = vector.broadcast %27 : vector<1x32xf32> to vector<2x32xf32>
    %359 = arith.mulf %358, %278 : vector<2x32xf32>
    %360 = arith.addf %359, %357 : vector<2x32xf32>
    %361 = vector.broadcast %35 : vector<1x32xf32> to vector<2x32xf32>
    %362 = arith.mulf %360, %361 : vector<2x32xf32>
    %cst_95 = arith.constant dense<0.000000e+00> : vector<2xf32>
    %363 = vector.multi_reduction <add>, %362, %cst_95 [1] : vector<2x32xf32> to vector<2xf32>
    %364 = vector.shape_cast %363 : vector<2xf32> to vector<2x1xf32>
    %365 = vector.broadcast %34 : vector<1x1xf32> to vector<2x1xf32>
    %366 = arith.addf %364, %365 : vector<2x1xf32>
    %367 = vector.broadcast %32 : vector<1x32xf32> to vector<2x32xf32>
    %368 = arith.mulf %367, %288 : vector<2x32xf32>
    %369 = vector.broadcast %366 : vector<2x1xf32> to vector<2x32xf32>
    %370 = arith.addf %368, %369 : vector<2x32xf32>
    %371 = arith.index_cast %c3_i32 : i32 to index
    %c0_96 = arith.constant 0 : index
    %c0_97 = arith.constant 0 : index
    %372 = vector.load %arg3[%371, %c0_96, %c0_97] : memref<8x2x128xf32, #tpu.memory_space<vmem>>, vector<1x2x32xf32>
    %373 = vector.shape_cast %372 : vector<1x2x32xf32> to vector<2x32xf32>
    %374 = vector.shape_cast %370 : vector<2x32xf32> to vector<1x2x32xf32>
    tpu.vector_store %arg3[%371, %c0_96, %c0_97], %374 {strides = array<i32>} : memref<8x2x128xf32, #tpu.memory_space<vmem>>, vector<1x2x32xf32>,
    %375 = arith.index_cast %c3_i32 : i32 to index
    %c0_98 = arith.constant 0 : index
    %c32_99 = arith.constant 32 : index
    %376 = vector.load %arg3[%375, %c0_98, %c32_99] : memref<8x2x128xf32, #tpu.memory_space<vmem>>, vector<1x2x1xf32>
    %377 = vector.shape_cast %376 : vector<1x2x1xf32> to vector<2x1xf32>
    %378 = vector.shape_cast %366 : vector<2x1xf32> to vector<1x2x1xf32>
    tpu.vector_store %arg3[%375, %c0_98, %c32_99], %378 {strides = array<i32>} : memref<8x2x128xf32, #tpu.memory_space<vmem>>, vector<1x2x1xf32>,
    %379 = arith.addf %297, %339 : vector<2x32xf32>
    %c4_i32 = arith.constant 4 : i32
    %380 = arith.index_cast %c4_i32 : i32 to index
    %c0_100 = arith.constant 0 : index
    %c0_101 = arith.constant 0 : index
    %381 = vector.load %arg4[%380, %c0_100, %c0_101] : memref<8x2x32xf32, #tpu.memory_space<vmem>>, vector<1x2x32xf32>
    %382 = vector.shape_cast %381 : vector<1x2x32xf32> to vector<2x32xf32>
    %383 = vector.broadcast %7 : vector<1x32xf32> to vector<2x32xf32>
    %384 = arith.subf %312, %383 : vector<2x32xf32>
    %cst_102 = arith.constant 0.000000e+00 : f32
    %385 = vector.broadcast %cst_102 : f32 to vector<2x32xf32>
    %386 = arith.cmpf ogt, %384, %385 : vector<2x32xf32>
    %387 = arith.extui %386 : vector<2x32xi1> to vector<2x32xi32>
    %388 = arith.sitofp %387 : vector<2x32xi32> to vector<2x32xf32>
    %389 = vector.broadcast %6 : vector<1x32xf32> to vector<2x32xf32>
    %390 = arith.mulf %389, %312 : vector<2x32xf32>
    %391 = arith.addf %390, %382 : vector<2x32xf32>
    %392 = vector.broadcast %7 : vector<1x32xf32> to vector<2x32xf32>
    %393 = arith.mulf %388, %392 : vector<2x32xf32>
    %394 = arith.subf %391, %393 : vector<2x32xf32>
    %395 = vector.broadcast %7 : vector<1x32xf32> to vector<2x32xf32>
    %396 = arith.subf %394, %395 : vector<2x32xf32>
    %cst_103 = arith.constant 0.000000e+00 : f32
    %397 = vector.broadcast %cst_103 : f32 to vector<2x32xf32>
    %398 = arith.cmpf ogt, %396, %397 : vector<2x32xf32>
    %399 = arith.extui %398 : vector<2x32xi1> to vector<2x32xi32>
    %400 = arith.sitofp %399 : vector<2x32xi32> to vector<2x32xf32>
    %cst_104 = arith.constant dense<0.000000e+00> : vector<2x32xf32>
    %401 = tpu.matmul %400, %37, %cst_104 {dimension_numbers = #tpu.dot_dimension_numbers<[1], [0], [0], [1], [0, 0, 1, 1], [], []>} : vector<2x32xf32>, vector<32x32xf32>, vector<2x32xf32> -> vector<2x32xf32>
    %402 = vector.broadcast %8 : vector<1x32xf32> to vector<2x32xf32>
    %403 = arith.addf %401, %402 : vector<2x32xf32>
    %404 = vector.broadcast %14 : vector<1x32xf32> to vector<2x32xf32>
    %405 = arith.subf %333, %404 : vector<2x32xf32>
    %cst_105 = arith.constant 0.000000e+00 : f32
    %406 = vector.broadcast %cst_105 : f32 to vector<2x32xf32>
    %407 = arith.cmpf ogt, %405, %406 : vector<2x32xf32>
    %408 = arith.extui %407 : vector<2x32xi1> to vector<2x32xi32>
    %409 = arith.sitofp %408 : vector<2x32xi32> to vector<2x32xf32>
    %410 = vector.broadcast %13 : vector<1x32xf32> to vector<2x32xf32>
    %411 = arith.mulf %410, %333 : vector<2x32xf32>
    %412 = arith.addf %411, %403 : vector<2x32xf32>
    %413 = vector.broadcast %14 : vector<1x32xf32> to vector<2x32xf32>
    %414 = arith.mulf %409, %413 : vector<2x32xf32>
    %415 = arith.subf %412, %414 : vector<2x32xf32>
    %416 = vector.broadcast %14 : vector<1x32xf32> to vector<2x32xf32>
    %417 = arith.subf %415, %416 : vector<2x32xf32>
    %cst_106 = arith.constant 0.000000e+00 : f32
    %418 = vector.broadcast %cst_106 : f32 to vector<2x32xf32>
    %419 = arith.cmpf ogt, %417, %418 : vector<2x32xf32>
    %420 = arith.extui %419 : vector<2x32xi1> to vector<2x32xi32>
    %421 = arith.sitofp %420 : vector<2x32xi32> to vector<2x32xf32>
    %cst_107 = arith.constant dense<0.000000e+00> : vector<2x32xf32>
    %422 = tpu.matmul %421, %39, %cst_107 {dimension_numbers = #tpu.dot_dimension_numbers<[1], [0], [0], [1], [0, 0, 1, 1], [], []>} : vector<2x32xf32>, vector<32x32xf32>, vector<2x32xf32> -> vector<2x32xf32>
    %423 = vector.broadcast %15 : vector<1x32xf32> to vector<2x32xf32>
    %424 = arith.addf %422, %423 : vector<2x32xf32>
    %425 = vector.broadcast %21 : vector<1x32xf32> to vector<2x32xf32>
    %426 = arith.subf %354, %425 : vector<2x32xf32>
    %cst_108 = arith.constant 0.000000e+00 : f32
    %427 = vector.broadcast %cst_108 : f32 to vector<2x32xf32>
    %428 = arith.cmpf ogt, %426, %427 : vector<2x32xf32>
    %429 = arith.extui %428 : vector<2x32xi1> to vector<2x32xi32>
    %430 = arith.sitofp %429 : vector<2x32xi32> to vector<2x32xf32>
    %431 = vector.broadcast %20 : vector<1x32xf32> to vector<2x32xf32>
    %432 = arith.mulf %431, %354 : vector<2x32xf32>
    %433 = arith.addf %432, %424 : vector<2x32xf32>
    %434 = vector.broadcast %21 : vector<1x32xf32> to vector<2x32xf32>
    %435 = arith.mulf %430, %434 : vector<2x32xf32>
    %436 = arith.subf %433, %435 : vector<2x32xf32>
    %cst_109 = arith.constant dense<0.000000e+00> : vector<2x32xf32>
    %437 = tpu.matmul %436, %41, %cst_109 {dimension_numbers = #tpu.dot_dimension_numbers<[1], [0], [0], [1], [0, 0, 1, 1], [], []>} : vector<2x32xf32>, vector<32x32xf32>, vector<2x32xf32> -> vector<2x32xf32>
    %438 = vector.broadcast %22 : vector<1x32xf32> to vector<2x32xf32>
    %439 = arith.addf %437, %438 : vector<2x32xf32>
    %440 = vector.broadcast %27 : vector<1x32xf32> to vector<2x32xf32>
    %441 = arith.mulf %440, %360 : vector<2x32xf32>
    %442 = arith.addf %441, %439 : vector<2x32xf32>
    %443 = vector.broadcast %35 : vector<1x32xf32> to vector<2x32xf32>
    %444 = arith.mulf %442, %443 : vector<2x32xf32>
    %cst_110 = arith.constant dense<0.000000e+00> : vector<2xf32>
    %445 = vector.multi_reduction <add>, %444, %cst_110 [1] : vector<2x32xf32> to vector<2xf32>
    %446 = vector.shape_cast %445 : vector<2xf32> to vector<2x1xf32>
    %447 = vector.broadcast %34 : vector<1x1xf32> to vector<2x1xf32>
    %448 = arith.addf %446, %447 : vector<2x1xf32>
    %449 = vector.broadcast %32 : vector<1x32xf32> to vector<2x32xf32>
    %450 = arith.mulf %449, %370 : vector<2x32xf32>
    %451 = vector.broadcast %448 : vector<2x1xf32> to vector<2x32xf32>
    %452 = arith.addf %450, %451 : vector<2x32xf32>
    %453 = arith.index_cast %c4_i32 : i32 to index
    %c0_111 = arith.constant 0 : index
    %c0_112 = arith.constant 0 : index
    %454 = vector.load %arg3[%453, %c0_111, %c0_112] : memref<8x2x128xf32, #tpu.memory_space<vmem>>, vector<1x2x32xf32>
    %455 = vector.shape_cast %454 : vector<1x2x32xf32> to vector<2x32xf32>
    %456 = vector.shape_cast %452 : vector<2x32xf32> to vector<1x2x32xf32>
    tpu.vector_store %arg3[%453, %c0_111, %c0_112], %456 {strides = array<i32>} : memref<8x2x128xf32, #tpu.memory_space<vmem>>, vector<1x2x32xf32>,
    %457 = arith.index_cast %c4_i32 : i32 to index
    %c0_113 = arith.constant 0 : index
    %c32_114 = arith.constant 32 : index
    %458 = vector.load %arg3[%457, %c0_113, %c32_114] : memref<8x2x128xf32, #tpu.memory_space<vmem>>, vector<1x2x1xf32>
    %459 = vector.shape_cast %458 : vector<1x2x1xf32> to vector<2x1xf32>
    %460 = vector.shape_cast %448 : vector<2x1xf32> to vector<1x2x1xf32>
    tpu.vector_store %arg3[%457, %c0_113, %c32_114], %460 {strides = array<i32>} : memref<8x2x128xf32, #tpu.memory_space<vmem>>, vector<1x2x1xf32>,
    %461 = arith.addf %379, %421 : vector<2x32xf32>
    %c5_i32 = arith.constant 5 : i32
    %462 = arith.index_cast %c5_i32 : i32 to index
    %c0_115 = arith.constant 0 : index
    %c0_116 = arith.constant 0 : index
    %463 = vector.load %arg4[%462, %c0_115, %c0_116] : memref<8x2x32xf32, #tpu.memory_space<vmem>>, vector<1x2x32xf32>
    %464 = vector.shape_cast %463 : vector<1x2x32xf32> to vector<2x32xf32>
    %465 = vector.broadcast %7 : vector<1x32xf32> to vector<2x32xf32>
    %466 = arith.subf %394, %465 : vector<2x32xf32>
    %cst_117 = arith.constant 0.000000e+00 : f32
    %467 = vector.broadcast %cst_117 : f32 to vector<2x32xf32>
    %468 = arith.cmpf ogt, %466, %467 : vector<2x32xf32>
    %469 = arith.extui %468 : vector<2x32xi1> to vector<2x32xi32>
    %470 = arith.sitofp %469 : vector<2x32xi32> to vector<2x32xf32>
    %471 = vector.broadcast %6 : vector<1x32xf32> to vector<2x32xf32>
    %472 = arith.mulf %471, %394 : vector<2x32xf32>
    %473 = arith.addf %472, %464 : vector<2x32xf32>
    %474 = vector.broadcast %7 : vector<1x32xf32> to vector<2x32xf32>
    %475 = arith.mulf %470, %474 : vector<2x32xf32>
    %476 = arith.subf %473, %475 : vector<2x32xf32>
    %477 = vector.broadcast %7 : vector<1x32xf32> to vector<2x32xf32>
    %478 = arith.subf %476, %477 : vector<2x32xf32>
    %cst_118 = arith.constant 0.000000e+00 : f32
    %479 = vector.broadcast %cst_118 : f32 to vector<2x32xf32>
    %480 = arith.cmpf ogt, %478, %479 : vector<2x32xf32>
    %481 = arith.extui %480 : vector<2x32xi1> to vector<2x32xi32>
    %482 = arith.sitofp %481 : vector<2x32xi32> to vector<2x32xf32>
    %cst_119 = arith.constant dense<0.000000e+00> : vector<2x32xf32>
    %483 = tpu.matmul %482, %37, %cst_119 {dimension_numbers = #tpu.dot_dimension_numbers<[1], [0], [0], [1], [0, 0, 1, 1], [], []>} : vector<2x32xf32>, vector<32x32xf32>, vector<2x32xf32> -> vector<2x32xf32>
    %484 = vector.broadcast %8 : vector<1x32xf32> to vector<2x32xf32>
    %485 = arith.addf %483, %484 : vector<2x32xf32>
    %486 = vector.broadcast %14 : vector<1x32xf32> to vector<2x32xf32>
    %487 = arith.subf %415, %486 : vector<2x32xf32>
    %cst_120 = arith.constant 0.000000e+00 : f32
    %488 = vector.broadcast %cst_120 : f32 to vector<2x32xf32>
    %489 = arith.cmpf ogt, %487, %488 : vector<2x32xf32>
    %490 = arith.extui %489 : vector<2x32xi1> to vector<2x32xi32>
    %491 = arith.sitofp %490 : vector<2x32xi32> to vector<2x32xf32>
    %492 = vector.broadcast %13 : vector<1x32xf32> to vector<2x32xf32>
    %493 = arith.mulf %492, %415 : vector<2x32xf32>
    %494 = arith.addf %493, %485 : vector<2x32xf32>
    %495 = vector.broadcast %14 : vector<1x32xf32> to vector<2x32xf32>
    %496 = arith.mulf %491, %495 : vector<2x32xf32>
    %497 = arith.subf %494, %496 : vector<2x32xf32>
    %498 = vector.broadcast %14 : vector<1x32xf32> to vector<2x32xf32>
    %499 = arith.subf %497, %498 : vector<2x32xf32>
    %cst_121 = arith.constant 0.000000e+00 : f32
    %500 = vector.broadcast %cst_121 : f32 to vector<2x32xf32>
    %501 = arith.cmpf ogt, %499, %500 : vector<2x32xf32>
    %502 = arith.extui %501 : vector<2x32xi1> to vector<2x32xi32>
    %503 = arith.sitofp %502 : vector<2x32xi32> to vector<2x32xf32>
    %cst_122 = arith.constant dense<0.000000e+00> : vector<2x32xf32>
    %504 = tpu.matmul %503, %39, %cst_122 {dimension_numbers = #tpu.dot_dimension_numbers<[1], [0], [0], [1], [0, 0, 1, 1], [], []>} : vector<2x32xf32>, vector<32x32xf32>, vector<2x32xf32> -> vector<2x32xf32>
    %505 = vector.broadcast %15 : vector<1x32xf32> to vector<2x32xf32>
    %506 = arith.addf %504, %505 : vector<2x32xf32>
    %507 = vector.broadcast %21 : vector<1x32xf32> to vector<2x32xf32>
    %508 = arith.subf %436, %507 : vector<2x32xf32>
    %cst_123 = arith.constant 0.000000e+00 : f32
    %509 = vector.broadcast %cst_123 : f32 to vector<2x32xf32>
    %510 = arith.cmpf ogt, %508, %509 : vector<2x32xf32>
    %511 = arith.extui %510 : vector<2x32xi1> to vector<2x32xi32>
    %512 = arith.sitofp %511 : vector<2x32xi32> to vector<2x32xf32>
    %513 = vector.broadcast %20 : vector<1x32xf32> to vector<2x32xf32>
    %514 = arith.mulf %513, %436 : vector<2x32xf32>
    %515 = arith.addf %514, %506 : vector<2x32xf32>
    %516 = vector.broadcast %21 : vector<1x32xf32> to vector<2x32xf32>
    %517 = arith.mulf %512, %516 : vector<2x32xf32>
    %518 = arith.subf %515, %517 : vector<2x32xf32>
    %cst_124 = arith.constant dense<0.000000e+00> : vector<2x32xf32>
    %519 = tpu.matmul %518, %41, %cst_124 {dimension_numbers = #tpu.dot_dimension_numbers<[1], [0], [0], [1], [0, 0, 1, 1], [], []>} : vector<2x32xf32>, vector<32x32xf32>, vector<2x32xf32> -> vector<2x32xf32>
    %520 = vector.broadcast %22 : vector<1x32xf32> to vector<2x32xf32>
    %521 = arith.addf %519, %520 : vector<2x32xf32>
    %522 = vector.broadcast %27 : vector<1x32xf32> to vector<2x32xf32>
    %523 = arith.mulf %522, %442 : vector<2x32xf32>
    %524 = arith.addf %523, %521 : vector<2x32xf32>
    %525 = vector.broadcast %35 : vector<1x32xf32> to vector<2x32xf32>
    %526 = arith.mulf %524, %525 : vector<2x32xf32>
    %cst_125 = arith.constant dense<0.000000e+00> : vector<2xf32>
    %527 = vector.multi_reduction <add>, %526, %cst_125 [1] : vector<2x32xf32> to vector<2xf32>
    %528 = vector.shape_cast %527 : vector<2xf32> to vector<2x1xf32>
    %529 = vector.broadcast %34 : vector<1x1xf32> to vector<2x1xf32>
    %530 = arith.addf %528, %529 : vector<2x1xf32>
    %531 = vector.broadcast %32 : vector<1x32xf32> to vector<2x32xf32>
    %532 = arith.mulf %531, %452 : vector<2x32xf32>
    %533 = vector.broadcast %530 : vector<2x1xf32> to vector<2x32xf32>
    %534 = arith.addf %532, %533 : vector<2x32xf32>
    %535 = arith.index_cast %c5_i32 : i32 to index
    %c0_126 = arith.constant 0 : index
    %c0_127 = arith.constant 0 : index
    %536 = vector.load %arg3[%535, %c0_126, %c0_127] : memref<8x2x128xf32, #tpu.memory_space<vmem>>, vector<1x2x32xf32>
    %537 = vector.shape_cast %536 : vector<1x2x32xf32> to vector<2x32xf32>
    %538 = vector.shape_cast %534 : vector<2x32xf32> to vector<1x2x32xf32>
    tpu.vector_store %arg3[%535, %c0_126, %c0_127], %538 {strides = array<i32>} : memref<8x2x128xf32, #tpu.memory_space<vmem>>, vector<1x2x32xf32>,
    %539 = arith.index_cast %c5_i32 : i32 to index
    %c0_128 = arith.constant 0 : index
    %c32_129 = arith.constant 32 : index
    %540 = vector.load %arg3[%539, %c0_128, %c32_129] : memref<8x2x128xf32, #tpu.memory_space<vmem>>, vector<1x2x1xf32>
    %541 = vector.shape_cast %540 : vector<1x2x1xf32> to vector<2x1xf32>
    %542 = vector.shape_cast %530 : vector<2x1xf32> to vector<1x2x1xf32>
    tpu.vector_store %arg3[%539, %c0_128, %c32_129], %542 {strides = array<i32>} : memref<8x2x128xf32, #tpu.memory_space<vmem>>, vector<1x2x1xf32>,
    %543 = arith.addf %461, %503 : vector<2x32xf32>
    %c6_i32 = arith.constant 6 : i32
    %544 = arith.index_cast %c6_i32 : i32 to index
    %c0_130 = arith.constant 0 : index
    %c0_131 = arith.constant 0 : index
    %545 = vector.load %arg4[%544, %c0_130, %c0_131] : memref<8x2x32xf32, #tpu.memory_space<vmem>>, vector<1x2x32xf32>
    %546 = vector.shape_cast %545 : vector<1x2x32xf32> to vector<2x32xf32>
    %547 = vector.broadcast %7 : vector<1x32xf32> to vector<2x32xf32>
    %548 = arith.subf %476, %547 : vector<2x32xf32>
    %cst_132 = arith.constant 0.000000e+00 : f32
    %549 = vector.broadcast %cst_132 : f32 to vector<2x32xf32>
    %550 = arith.cmpf ogt, %548, %549 : vector<2x32xf32>
    %551 = arith.extui %550 : vector<2x32xi1> to vector<2x32xi32>
    %552 = arith.sitofp %551 : vector<2x32xi32> to vector<2x32xf32>
    %553 = vector.broadcast %6 : vector<1x32xf32> to vector<2x32xf32>
    %554 = arith.mulf %553, %476 : vector<2x32xf32>
    %555 = arith.addf %554, %546 : vector<2x32xf32>
    %556 = vector.broadcast %7 : vector<1x32xf32> to vector<2x32xf32>
    %557 = arith.mulf %552, %556 : vector<2x32xf32>
    %558 = arith.subf %555, %557 : vector<2x32xf32>
    %559 = vector.broadcast %7 : vector<1x32xf32> to vector<2x32xf32>
    %560 = arith.subf %558, %559 : vector<2x32xf32>
    %cst_133 = arith.constant 0.000000e+00 : f32
    %561 = vector.broadcast %cst_133 : f32 to vector<2x32xf32>
    %562 = arith.cmpf ogt, %560, %561 : vector<2x32xf32>
    %563 = arith.extui %562 : vector<2x32xi1> to vector<2x32xi32>
    %564 = arith.sitofp %563 : vector<2x32xi32> to vector<2x32xf32>
    %cst_134 = arith.constant dense<0.000000e+00> : vector<2x32xf32>
    %565 = tpu.matmul %564, %37, %cst_134 {dimension_numbers = #tpu.dot_dimension_numbers<[1], [0], [0], [1], [0, 0, 1, 1], [], []>} : vector<2x32xf32>, vector<32x32xf32>, vector<2x32xf32> -> vector<2x32xf32>
    %566 = vector.broadcast %8 : vector<1x32xf32> to vector<2x32xf32>
    %567 = arith.addf %565, %566 : vector<2x32xf32>
    %568 = vector.broadcast %14 : vector<1x32xf32> to vector<2x32xf32>
    %569 = arith.subf %497, %568 : vector<2x32xf32>
    %cst_135 = arith.constant 0.000000e+00 : f32
    %570 = vector.broadcast %cst_135 : f32 to vector<2x32xf32>
    %571 = arith.cmpf ogt, %569, %570 : vector<2x32xf32>
    %572 = arith.extui %571 : vector<2x32xi1> to vector<2x32xi32>
    %573 = arith.sitofp %572 : vector<2x32xi32> to vector<2x32xf32>
    %574 = vector.broadcast %13 : vector<1x32xf32> to vector<2x32xf32>
    %575 = arith.mulf %574, %497 : vector<2x32xf32>
    %576 = arith.addf %575, %567 : vector<2x32xf32>
    %577 = vector.broadcast %14 : vector<1x32xf32> to vector<2x32xf32>
    %578 = arith.mulf %573, %577 : vector<2x32xf32>
    %579 = arith.subf %576, %578 : vector<2x32xf32>
    %580 = vector.broadcast %14 : vector<1x32xf32> to vector<2x32xf32>
    %581 = arith.subf %579, %580 : vector<2x32xf32>
    %cst_136 = arith.constant 0.000000e+00 : f32
    %582 = vector.broadcast %cst_136 : f32 to vector<2x32xf32>
    %583 = arith.cmpf ogt, %581, %582 : vector<2x32xf32>
    %584 = arith.extui %583 : vector<2x32xi1> to vector<2x32xi32>
    %585 = arith.sitofp %584 : vector<2x32xi32> to vector<2x32xf32>
    %cst_137 = arith.constant dense<0.000000e+00> : vector<2x32xf32>
    %586 = tpu.matmul %585, %39, %cst_137 {dimension_numbers = #tpu.dot_dimension_numbers<[1], [0], [0], [1], [0, 0, 1, 1], [], []>} : vector<2x32xf32>, vector<32x32xf32>, vector<2x32xf32> -> vector<2x32xf32>
    %587 = vector.broadcast %15 : vector<1x32xf32> to vector<2x32xf32>
    %588 = arith.addf %586, %587 : vector<2x32xf32>
    %589 = vector.broadcast %21 : vector<1x32xf32> to vector<2x32xf32>
    %590 = arith.subf %518, %589 : vector<2x32xf32>
    %cst_138 = arith.constant 0.000000e+00 : f32
    %591 = vector.broadcast %cst_138 : f32 to vector<2x32xf32>
    %592 = arith.cmpf ogt, %590, %591 : vector<2x32xf32>
    %593 = arith.extui %592 : vector<2x32xi1> to vector<2x32xi32>
    %594 = arith.sitofp %593 : vector<2x32xi32> to vector<2x32xf32>
    %595 = vector.broadcast %20 : vector<1x32xf32> to vector<2x32xf32>
    %596 = arith.mulf %595, %518 : vector<2x32xf32>
    %597 = arith.addf %596, %588 : vector<2x32xf32>
    %598 = vector.broadcast %21 : vector<1x32xf32> to vector<2x32xf32>
    %599 = arith.mulf %594, %598 : vector<2x32xf32>
    %600 = arith.subf %597, %599 : vector<2x32xf32>
    %cst_139 = arith.constant dense<0.000000e+00> : vector<2x32xf32>
    %601 = tpu.matmul %600, %41, %cst_139 {dimension_numbers = #tpu.dot_dimension_numbers<[1], [0], [0], [1], [0, 0, 1, 1], [], []>} : vector<2x32xf32>, vector<32x32xf32>, vector<2x32xf32> -> vector<2x32xf32>
    %602 = vector.broadcast %22 : vector<1x32xf32> to vector<2x32xf32>
    %603 = arith.addf %601, %602 : vector<2x32xf32>
    %604 = vector.broadcast %27 : vector<1x32xf32> to vector<2x32xf32>
    %605 = arith.mulf %604, %524 : vector<2x32xf32>
    %606 = arith.addf %605, %603 : vector<2x32xf32>
    %607 = vector.broadcast %35 : vector<1x32xf32> to vector<2x32xf32>
    %608 = arith.mulf %606, %607 : vector<2x32xf32>
    %cst_140 = arith.constant dense<0.000000e+00> : vector<2xf32>
    %609 = vector.multi_reduction <add>, %608, %cst_140 [1] : vector<2x32xf32> to vector<2xf32>
    %610 = vector.shape_cast %609 : vector<2xf32> to vector<2x1xf32>
    %611 = vector.broadcast %34 : vector<1x1xf32> to vector<2x1xf32>
    %612 = arith.addf %610, %611 : vector<2x1xf32>
    %613 = vector.broadcast %32 : vector<1x32xf32> to vector<2x32xf32>
    %614 = arith.mulf %613, %534 : vector<2x32xf32>
    %615 = vector.broadcast %612 : vector<2x1xf32> to vector<2x32xf32>
    %616 = arith.addf %614, %615 : vector<2x32xf32>
    %617 = arith.index_cast %c6_i32 : i32 to index
    %c0_141 = arith.constant 0 : index
    %c0_142 = arith.constant 0 : index
    %618 = vector.load %arg3[%617, %c0_141, %c0_142] : memref<8x2x128xf32, #tpu.memory_space<vmem>>, vector<1x2x32xf32>
    %619 = vector.shape_cast %618 : vector<1x2x32xf32> to vector<2x32xf32>
    %620 = vector.shape_cast %616 : vector<2x32xf32> to vector<1x2x32xf32>
    tpu.vector_store %arg3[%617, %c0_141, %c0_142], %620 {strides = array<i32>} : memref<8x2x128xf32, #tpu.memory_space<vmem>>, vector<1x2x32xf32>,
    %621 = arith.index_cast %c6_i32 : i32 to index
    %c0_143 = arith.constant 0 : index
    %c32_144 = arith.constant 32 : index
    %622 = vector.load %arg3[%621, %c0_143, %c32_144] : memref<8x2x128xf32, #tpu.memory_space<vmem>>, vector<1x2x1xf32>
    %623 = vector.shape_cast %622 : vector<1x2x1xf32> to vector<2x1xf32>
    %624 = vector.shape_cast %612 : vector<2x1xf32> to vector<1x2x1xf32>
    tpu.vector_store %arg3[%621, %c0_143, %c32_144], %624 {strides = array<i32>} : memref<8x2x128xf32, #tpu.memory_space<vmem>>, vector<1x2x1xf32>,
    %625 = arith.addf %543, %585 : vector<2x32xf32>
    %c7_i32 = arith.constant 7 : i32
    %626 = arith.index_cast %c7_i32 : i32 to index
    %c0_145 = arith.constant 0 : index
    %c0_146 = arith.constant 0 : index
    %627 = vector.load %arg4[%626, %c0_145, %c0_146] : memref<8x2x32xf32, #tpu.memory_space<vmem>>, vector<1x2x32xf32>
    %628 = vector.shape_cast %627 : vector<1x2x32xf32> to vector<2x32xf32>
    %629 = vector.broadcast %7 : vector<1x32xf32> to vector<2x32xf32>
    %630 = arith.subf %558, %629 : vector<2x32xf32>
    %cst_147 = arith.constant 0.000000e+00 : f32
    %631 = vector.broadcast %cst_147 : f32 to vector<2x32xf32>
    %632 = arith.cmpf ogt, %630, %631 : vector<2x32xf32>
    %633 = arith.extui %632 : vector<2x32xi1> to vector<2x32xi32>
    %634 = arith.sitofp %633 : vector<2x32xi32> to vector<2x32xf32>
    %635 = vector.broadcast %6 : vector<1x32xf32> to vector<2x32xf32>
    %636 = arith.mulf %635, %558 : vector<2x32xf32>
    %637 = arith.addf %636, %628 : vector<2x32xf32>
    %638 = vector.broadcast %7 : vector<1x32xf32> to vector<2x32xf32>
    %639 = arith.mulf %634, %638 : vector<2x32xf32>
    %640 = arith.subf %637, %639 : vector<2x32xf32>
    %641 = vector.broadcast %7 : vector<1x32xf32> to vector<2x32xf32>
    %642 = arith.subf %640, %641 : vector<2x32xf32>
    %cst_148 = arith.constant 0.000000e+00 : f32
    %643 = vector.broadcast %cst_148 : f32 to vector<2x32xf32>
    %644 = arith.cmpf ogt, %642, %643 : vector<2x32xf32>
    %645 = arith.extui %644 : vector<2x32xi1> to vector<2x32xi32>
    %646 = arith.sitofp %645 : vector<2x32xi32> to vector<2x32xf32>
    %cst_149 = arith.constant dense<0.000000e+00> : vector<2x32xf32>
    %647 = tpu.matmul %646, %37, %cst_149 {dimension_numbers = #tpu.dot_dimension_numbers<[1], [0], [0], [1], [0, 0, 1, 1], [], []>} : vector<2x32xf32>, vector<32x32xf32>, vector<2x32xf32> -> vector<2x32xf32>
    %648 = vector.broadcast %8 : vector<1x32xf32> to vector<2x32xf32>
    %649 = arith.addf %647, %648 : vector<2x32xf32>
    %650 = vector.broadcast %14 : vector<1x32xf32> to vector<2x32xf32>
    %651 = arith.subf %579, %650 : vector<2x32xf32>
    %cst_150 = arith.constant 0.000000e+00 : f32
    %652 = vector.broadcast %cst_150 : f32 to vector<2x32xf32>
    %653 = arith.cmpf ogt, %651, %652 : vector<2x32xf32>
    %654 = arith.extui %653 : vector<2x32xi1> to vector<2x32xi32>
    %655 = arith.sitofp %654 : vector<2x32xi32> to vector<2x32xf32>
    %656 = vector.broadcast %13 : vector<1x32xf32> to vector<2x32xf32>
    %657 = arith.mulf %656, %579 : vector<2x32xf32>
    %658 = arith.addf %657, %649 : vector<2x32xf32>
    %659 = vector.broadcast %14 : vector<1x32xf32> to vector<2x32xf32>
    %660 = arith.mulf %655, %659 : vector<2x32xf32>
    %661 = arith.subf %658, %660 : vector<2x32xf32>
    %662 = vector.broadcast %14 : vector<1x32xf32> to vector<2x32xf32>
    %663 = arith.subf %661, %662 : vector<2x32xf32>
    %cst_151 = arith.constant 0.000000e+00 : f32
    %664 = vector.broadcast %cst_151 : f32 to vector<2x32xf32>
    %665 = arith.cmpf ogt, %663, %664 : vector<2x32xf32>
    %666 = arith.extui %665 : vector<2x32xi1> to vector<2x32xi32>
    %667 = arith.sitofp %666 : vector<2x32xi32> to vector<2x32xf32>
    %cst_152 = arith.constant dense<0.000000e+00> : vector<2x32xf32>
    %668 = tpu.matmul %667, %39, %cst_152 {dimension_numbers = #tpu.dot_dimension_numbers<[1], [0], [0], [1], [0, 0, 1, 1], [], []>} : vector<2x32xf32>, vector<32x32xf32>, vector<2x32xf32> -> vector<2x32xf32>
    %669 = vector.broadcast %15 : vector<1x32xf32> to vector<2x32xf32>
    %670 = arith.addf %668, %669 : vector<2x32xf32>
    %671 = vector.broadcast %21 : vector<1x32xf32> to vector<2x32xf32>
    %672 = arith.subf %600, %671 : vector<2x32xf32>
    %cst_153 = arith.constant 0.000000e+00 : f32
    %673 = vector.broadcast %cst_153 : f32 to vector<2x32xf32>
    %674 = arith.cmpf ogt, %672, %673 : vector<2x32xf32>
    %675 = arith.extui %674 : vector<2x32xi1> to vector<2x32xi32>
    %676 = arith.sitofp %675 : vector<2x32xi32> to vector<2x32xf32>
    %677 = vector.broadcast %20 : vector<1x32xf32> to vector<2x32xf32>
    %678 = arith.mulf %677, %600 : vector<2x32xf32>
    %679 = arith.addf %678, %670 : vector<2x32xf32>
    %680 = vector.broadcast %21 : vector<1x32xf32> to vector<2x32xf32>
    %681 = arith.mulf %676, %680 : vector<2x32xf32>
    %682 = arith.subf %679, %681 : vector<2x32xf32>
    %cst_154 = arith.constant dense<0.000000e+00> : vector<2x32xf32>
    %683 = tpu.matmul %682, %41, %cst_154 {dimension_numbers = #tpu.dot_dimension_numbers<[1], [0], [0], [1], [0, 0, 1, 1], [], []>} : vector<2x32xf32>, vector<32x32xf32>, vector<2x32xf32> -> vector<2x32xf32>
    %684 = vector.broadcast %22 : vector<1x32xf32> to vector<2x32xf32>
    %685 = arith.addf %683, %684 : vector<2x32xf32>
    %686 = vector.broadcast %27 : vector<1x32xf32> to vector<2x32xf32>
    %687 = arith.mulf %686, %606 : vector<2x32xf32>
    %688 = arith.addf %687, %685 : vector<2x32xf32>
    %689 = vector.broadcast %35 : vector<1x32xf32> to vector<2x32xf32>
    %690 = arith.mulf %688, %689 : vector<2x32xf32>
    %cst_155 = arith.constant dense<0.000000e+00> : vector<2xf32>
    %691 = vector.multi_reduction <add>, %690, %cst_155 [1] : vector<2x32xf32> to vector<2xf32>
    %692 = vector.shape_cast %691 : vector<2xf32> to vector<2x1xf32>
    %693 = vector.broadcast %34 : vector<1x1xf32> to vector<2x1xf32>
    %694 = arith.addf %692, %693 : vector<2x1xf32>
    %695 = vector.broadcast %32 : vector<1x32xf32> to vector<2x32xf32>
    %696 = arith.mulf %695, %616 : vector<2x32xf32>
    %697 = vector.broadcast %694 : vector<2x1xf32> to vector<2x32xf32>
    %698 = arith.addf %696, %697 : vector<2x32xf32>
    %699 = arith.index_cast %c7_i32 : i32 to index
    %c0_156 = arith.constant 0 : index
    %c0_157 = arith.constant 0 : index
    %700 = vector.load %arg3[%699, %c0_156, %c0_157] : memref<8x2x128xf32, #tpu.memory_space<vmem>>, vector<1x2x32xf32>
    %701 = vector.shape_cast %700 : vector<1x2x32xf32> to vector<2x32xf32>
    %702 = vector.shape_cast %698 : vector<2x32xf32> to vector<1x2x32xf32>
    tpu.vector_store %arg3[%699, %c0_156, %c0_157], %702 {strides = array<i32>} : memref<8x2x128xf32, #tpu.memory_space<vmem>>, vector<1x2x32xf32>,
    %703 = arith.index_cast %c7_i32 : i32 to index
    %c0_158 = arith.constant 0 : index
    %c32_159 = arith.constant 32 : index
    %704 = vector.load %arg3[%703, %c0_158, %c32_159] : memref<8x2x128xf32, #tpu.memory_space<vmem>>, vector<1x2x1xf32>
    %705 = vector.shape_cast %704 : vector<1x2x1xf32> to vector<2x1xf32>
    %706 = vector.shape_cast %694 : vector<2x1xf32> to vector<1x2x1xf32>
    tpu.vector_store %arg3[%703, %c0_158, %c32_159], %706 {strides = array<i32>} : memref<8x2x128xf32, #tpu.memory_space<vmem>>, vector<1x2x1xf32>,
    %707 = arith.addf %625, %667 : vector<2x32xf32>
    %c8_i32 = arith.constant 8 : i32
    %c0_160 = arith.constant 0 : index
    %c0_161 = arith.constant 0 : index
    %c0_162 = arith.constant 0 : index
    %708 = vector.load %arg3[%c0_160, %c0_161, %c0_162] : memref<8x2x128xf32, #tpu.memory_space<vmem>>, vector<8x2x32xf32>
    %709 = vector.shape_cast %33 : vector<1x32xf32> to vector<1x1x32xf32>
    %710 = vector.broadcast %709 : vector<1x1x32xf32> to vector<8x2x32xf32>
    %711 = arith.subf %708, %710 : vector<8x2x32xf32>
    %cst_163 = arith.constant 0.000000e+00 : f32
    %712 = vector.broadcast %cst_163 : f32 to vector<8x2x32xf32>
    %713 = arith.cmpf ogt, %711, %712 : vector<8x2x32xf32>
    %714 = arith.extui %713 : vector<8x2x32xi1> to vector<8x2x32xi32>
    %715 = arith.sitofp %714 : vector<8x2x32xi32> to vector<8x2x32xf32>
    %c0_164 = arith.constant 0 : index
    %c0_165 = arith.constant 0 : index
    %c0_166 = arith.constant 0 : index
    %716 = vector.load %arg3[%c0_164, %c0_165, %c0_166] : memref<8x2x128xf32, #tpu.memory_space<vmem>>, vector<8x2x32xf32>
    tpu.vector_store %arg3[%c0_164, %c0_165, %c0_166], %715 {strides = array<i32>} : memref<8x2x128xf32, #tpu.memory_space<vmem>>, vector<8x2x32xf32>,
    %cst_167 = arith.constant dense<0.000000e+00> : vector<8x2xf32>
    %717 = vector.multi_reduction <add>, %708, %cst_167 [2] : vector<8x2x32xf32> to vector<8x2xf32>
    %718 = vector.shape_cast %717 : vector<8x2xf32> to vector<8x2x1xf32>
    %cst_168 = arith.constant 3.125000e-02 : f32
    %719 = vector.broadcast %cst_168 : f32 to vector<8x2x1xf32>
    %720 = arith.mulf %718, %719 : vector<8x2x1xf32>
    %c0_169 = arith.constant 0 : index
    %c0_170 = arith.constant 0 : index
    %c33 = arith.constant 33 : index
    %721 = vector.load %arg3[%c0_169, %c0_170, %c33] : memref<8x2x128xf32, #tpu.memory_space<vmem>>, vector<8x2x1xf32>
    tpu.vector_store %arg3[%c0_169, %c0_170, %c33], %720 {strides = array<i32>} : memref<8x2x128xf32, #tpu.memory_space<vmem>>, vector<8x2x1xf32>,
    %cst_171 = arith.constant dense<0.000000e+00> : vector<2xf32>
    %722 = vector.multi_reduction <add>, %707, %cst_171 [1] : vector<2x32xf32> to vector<2xf32>
    %723 = vector.shape_cast %722 : vector<2xf32> to vector<2x1xf32>
    %cst_172 = arith.constant dense<0.000000e+00> : vector<1xf32>
    %724 = vector.multi_reduction <add>, %723, %cst_172 [0] : vector<2x1xf32> to vector<1xf32>
    %725 = vector.shape_cast %724 : vector<1xf32> to vector<1x1xf32>
    %cst_173 = arith.constant 0.001953125 : f32
    %726 = vector.broadcast %cst_173 : f32 to vector<1x1xf32>
    %727 = arith.mulf %725, %726 : vector<1x1xf32>
    %c0_174 = arith.constant 0 : index
    %c0_175 = arith.constant 0 : index
    %c34 = arith.constant 34 : index
    %728 = vector.load %arg3[%c0_174, %c0_175, %c34] : memref<8x2x128xf32, #tpu.memory_space<vmem>>, vector<1x1x1xf32>
    %729 = vector.shape_cast %728 : vector<1x1x1xf32> to vector<1x1xf32>
    %730 = vector.shape_cast %727 : vector<1x1xf32> to vector<1x1x1xf32>
    tpu.vector_store %arg3[%c0_174, %c0_175, %c34], %730 {strides = array<i32>} : memref<8x2x128xf32, #tpu.memory_space<vmem>>, vector<1x1x1xf32>,
    return
  }
}

</mosaic_0001>

<bundles_post_ra>
// kernel: tpu_custom_call.1
= control target key start
LH: loop header
LB: loop body
LE: loop exit
PB: predicated region body
PF: predicated region fallthrough
CT: control target
= control target key end

     0   :  { %8 = vsyncpa [#allocation4], 0  ;;  %s1977_s0 = inlined_call_operand.vmem [shape: f32[8,2,1], index: 0, kind: input, shape index: {}]   ;;  %s1978_s1 = inlined_call_operand.vmem [shape: f32[16,32], index: 1, kind: input, shape index: {}]   ;;  %s1979_s2 = inlined_call_operand.hbm [shape: f32[3,32,32], index: 2, kind: input, shape index: {}]   ;;  %s1980_s3 = inlined_call_operand.hbm [shape: f32[8,2,128], index: 3, kind: output, shape index: {}]  }
   0x1   :  { %9 = vsyncpa [#allocation5], 0  ;;  %s18_s14 = sshll.u32 %s1979_s2, 4  ;;  %s1350_s15 = smov [#allocation3]   ;;  %s19_s14 = int_to_ptr.hbm [resolvable:$true] %s18_s14 }
   0x2   :  { %s20_s16 = sshll.u32 %s1350_s15, 4  ;;  %s1351_s17 = smov 128   ;;  %s21_s16 = int_to_ptr.vmem [resolvable:$true] %s20_s16 }
   0x3   :  { %s1352_s18 = smov 8  }
   0x4   :  { %26 = dma.hbm_to_vmem [thread:$0]  %s19_s14, 1536, %s21_s16, [#allocation4], %s1351_s17, %s1351_s17, %s1352_s18  }
   0x5   :  { %1346 = dma.done.wait [#allocation4], 1536  }
   0x6   :  { %1347 = vsyncadd [#allocation4], 4294965760  ;;  %v1353_v0 = vmov 0   ;;  %v71_v1 = vld [vmem:[%s1977_s0] sm:$0x3]  ;;  %v1405_v9 = vld [vmem:[#allocation3 + $0x18] sm:$0xff] }
   0x7   :  { %1284 = vset.pattern.permute.xlu0 %v1353_v0  ;;  %1285 = vset.pattern.permute.xlu1 %v1353_v0  ;;  %v73_v2 = vld [vmem:[%s1977_s0 + $0x4] sm:$0x3]  ;;  %v75_v3 = vld [vmem:[%s1977_s0 + $0x8] sm:$0x3]  ;;  %v72_v4 = vld [vmem:[%s1977_s0 + $0x2] sm:$0x3] }
   0x8   :  { %1286 = vset.pattern.permute.xlu2 %v1353_v0  ;;  %81 = vperm.xlu0 %1284, %v71_v1   ;;  %v74_v5 = vld [vmem:[%s1977_s0 + $0x6] sm:$0x3]  ;;  %v76_v6 = vld [vmem:[%s1977_s0 + $0xa] sm:$0x3]  ;;  %v77_v7 = vld [vmem:[%s1977_s0 + $0xc] sm:$0x3] }
   0x9   :  { %91 = vperm.xlu1 %1285, %v73_v2   ;;  %101 = vperm.xlu2 %1286, %v75_v3   ;;  %v78_v8 = vld [vmem:[%s1977_s0 + $0xe] sm:$0x3]  ;;  %v1409_v10 = vld [vmem:[#allocation3 + $0x10] sm:$0xff]  ;;  %v1413_v11 = vld [vmem:[#allocation3 + $0x8] sm:$0xff]  ;;  %vm137_vm0 = vcmask 254976   ;;  %v1354_v33 = vmov 0.0  }
   0xa   :  { %178 = vmatpush.msra.mxu0 %v1405_v9  ;;  %308 = vmatpush.msra.mxu3 %v1405_v9  ;;  %v1417_v12 = vld [vmem:[#allocation3] sm:$0xff]  ;;  %v33_v13 = vld [vmem:[%s1978_s1 + $0x2] sm:$0x1]  ;;  %v1287_v15 = vld [vmem:[%s1978_s1] ss:$0 sm:$0xff]  ;;  %vm162_vm2 = vcmask 261120  }
   0xb   :  { %v34_v14 = vmax.f32 %v33_v13, 0.0  ;;  %v1430_v16 = vld [vmem:[%s1978_s1 + $0x3] ss:$0 sm:$0xff]  ;;  %v1288_v18 = vld [vmem:[%s1978_s1 + $0x1] ss:$0 sm:$0xff]  ;;  %v1461_v2 = vld [vmem:[#allocation3 + $0x38] sm:$0xff] }
   0xc   :  { %179 = vmatpush.msra.mxu0 %v1409_v10  ;;  %309 = vmatpush.msra.mxu3 %v1409_v10  ;;  %v148_v25 = vsub.f32 0.0, %v1430_v16  ;;  %v1465_v3 = vld [vmem:[#allocation3 + $0x30] sm:$0xff]  ;;  %s1355_s6 = smov 32   ;;  %s1205_s13 = sshll.u32 %s1980_s3, 4  ;;  %s1206_s13 = int_to_ptr.hbm [resolvable:$true] %s1205_s13 }
   0xd   :  { %v35_v22 = vmin.f32 %v34_v14, 1.0  ;;  %216 = vmatpush.msra.mxu1 %v1461_v2  ;;  %s1357_s14 = smov 2  }
   0xe   :  { %180 = vmatpush.msra.mxu0 %v1413_v11  ;;  %310 = vmatpush.msra.mxu3 %v1413_v11  ;;  %vm149_vm1 = vcmp.gt.f32.partialorder %v148_v25, 0.0 }
   0xf   :  { %v1438_v29 = vperm.slane %v35_v22, 0  ;;  %v1218_v34 = vsel %vm149_vm1, 1.0, %v1354_v33  ;;  %217 = vmatpush.msra.mxu1 %v1465_v3 }
  0x10   :  { %86 = vperm.xlu0 %1284, %v72_v4   ;;  %181 = vmatpush.msra.mxu0 %v1417_v12  ;;  %v155_v41 = vmul.f32 %v1430_v16, %v1218_v34  ;;  %v1467_v4 = vld [vmem:[#allocation3 + $0x28] sm:$0xff] }
  0x11   :  { %96 = vperm.xlu1 %1285, %v74_v5   ;;  %106 = vperm.xlu2 %1286, %v76_v6   ;;  %v153_v37 = vmul.f32 0.0, %v1438_v29  ;;  %v1472_v5 = vld [vmem:[#allocation3 + $0x20] sm:$0xff]  ;;  %v38_v6 = vld [vmem:[%s1978_s1 + $0x5] sm:$0x1] }
  0x12   :  { %311 = vmatpush.msra.mxu3 %v1417_v12  ;;  %339 = vmatpush.msrb.mxu0 %v1461_v2 }
  0x13   :  { %218 = vmatpush.msra.mxu1 %v1467_v4 }
  0x14   :  { %455 = vmatpush.msrb.mxu3 %v1461_v2  ;;  %340 = vmatpush.msrb.mxu0 %v1465_v3 }
  0x15   :  { %219 = vmatpush.msra.mxu1 %v1472_v5 }
  0x16   :  { %456 = vmatpush.msrb.mxu3 %v1465_v3  ;;  %341 = vmatpush.msrb.mxu0 %v1467_v4 }
  0x18   :  { %111 = vperm.xlu0 %1284, %v77_v7   ;;  %457 = vmatpush.msrb.mxu3 %v1467_v4  ;;  %v39_v7 = vmax.f32 %v38_v6, 0.0 }
  0x19   :  { %116 = vperm.xlu1 %1285, %v78_v8   ;;  %342 = vmatpush.msrb.mxu0 %v1472_v5  ;;  %v1487_v8 = vld [vmem:[%s1978_s1 + $0x6] ss:$0 sm:$0xff] }
  0x1a   :  { %458 = vmatpush.msrb.mxu3 %v1472_v5  ;;  %v40_v13 = vmin.f32 %v39_v7, 1.0  ;;  %v187_v14 = vsub.f32 0.0, %v1487_v8 }
  0x1c   :  { %vm188_vm5 = vcmp.gt.f32.partialorder %v187_v14, 0.0 }
  0x63   :  { %v102_v17 = vpop.permute.xlu2 %101 }
  0x64   :  { %v124_v19 = vmul.f32 %v1287_v15, %v102_v17  ;;  %v1495_v17 = vld [vmem:[%s1978_s1 + $0x4] ss:$0 sm:$0xff] }
  0x66   :  { %v133_v26 = vadd.f32 %v1288_v18, %v124_v19 }
  0x68   :  { %142 = vst.msk [vmem:[#allocation2 + $0x8] sm:$0x3] %vm137_vm0, %v133_v26 }
  0x6b   :  { %v107_v30 = vpop.permute.xlu2 %106 }
  0x6c   :  { %v125_v31 = vmul.f32 %v1287_v15, %v107_v30 }
  0x6e   :  { %v134_v39 = vadd.f32 %v1288_v18, %v125_v31 }
  0x70   :  { %143 = vst.msk [vmem:[#allocation2 + $0xa] sm:$0x3] %vm137_vm0, %v134_v39  ;;  %v1523_v39 = vld [vmem:[#allocation3 + $0x50] sm:$0xff] }
  0x7a   :  { %v82_v20 = vpop.permute.xlu0 %81 }
  0x7b   :  { %v92_v21 = vpop.permute.xlu1 %91  ;;  %v120_v23 = vmul.f32 %v1287_v15, %v82_v20 }
  0x7c   :  { %v122_v24 = vmul.f32 %v1287_v15, %v92_v21 }
  0x7d   :  { %v129_v27 = vadd.f32 %v1288_v18, %v120_v23 }
  0x7e   :  { %v131_v28 = vadd.f32 %v1288_v18, %v122_v24 }
  0x7f   :  { %138 = vst.msk [vmem:[#allocation2] sm:$0x3] %vm137_vm0, %v129_v27 }
  0x80   :  { %140 = vst.msk [vmem:[#allocation2 + $0x4] sm:$0x3] %vm137_vm0, %v131_v28 }
  0x82   :  { %v87_v32 = vpop.permute.xlu0 %86 }
  0x83   :  { %v97_v35 = vpop.permute.xlu1 %96  ;;  %v121_v36 = vmul.f32 %v1287_v15, %v87_v32 }
  0x84   :  { %v123_v38 = vmul.f32 %v1287_v15, %v97_v35 }
  0x85   :  { %v130_v40 = vadd.f32 %v1288_v18, %v121_v36 }
  0x86   :  { %v132_v42 = vadd.f32 %v1288_v18, %v123_v38  ;;  %v146_v43 = vld [vmem:[#allocation2] sm:$0x3]  ;;  %v1519_v38 = vld [vmem:[#allocation3 + $0x58] sm:$0xff] }
  0x87   :  { %139 = vst.msk [vmem:[#allocation2 + $0x2] sm:$0x3] %vm137_vm0, %v130_v40  ;;  %v154_v44 = vadd.f32 %v153_v37, %v146_v43  ;;  %v400_v61 = vld [vmem:[#allocation2 + $0x4] sm:$0x3]  ;;  %250 = vmatpush.msra.mxu2 %v1519_v38  ;;  %370 = vmatpush.msrb.mxu1 %v1519_v38  ;;  %v1529_v40 = vld [vmem:[#allocation3 + $0x48] sm:$0xff] }
  0x88   :  { %141 = vst.msk [vmem:[#allocation2 + $0x6] sm:$0x3] %vm137_vm0, %v132_v42  ;;  %v43_v42 = vld [vmem:[%s1978_s1 + $0x8] sm:$0x1] }
  0x89   :  { %v156_v45 = vsub.f32 %v154_v44, %v155_v41  ;;  %251 = vmatpush.msra.mxu2 %v1523_v39  ;;  %371 = vmatpush.msrb.mxu1 %v1523_v39  ;;  %v1531_v41 = vld [vmem:[#allocation3 + $0x40] sm:$0xff]  ;;  %v44_v43 = vmax.f32 %v43_v42, 0.0  ;;  %v1561_v44 = vld [vmem:[%s1978_s1 + $0x9] ss:$0 sm:$0xff] }
  0x8a   :  { %v112_v46 = vpop.permute.xlu0 %111 }
  0x8b   :  { %v117_v47 = vpop.permute.xlu1 %116  ;;  %v126_v48 = vmul.f32 %v1287_v15, %v112_v46  ;;  %v157_v49 = vsub.f32 %v156_v45, %v1430_v16  ;;  %v285_v52 = vmul.f32 %v156_v45, %v1438_v29  ;;  %252 = vmatpush.msra.mxu2 %v1529_v40  ;;  %372 = vmatpush.msrb.mxu1 %v1529_v40  ;;  %v45_v45 = vmin.f32 %v44_v43, 1.0 }
  0x8c   :  { %v127_v50 = vmul.f32 %v1287_v15, %v117_v47  ;;  %v1490_v15 = vperm.slane %v40_v13, 0  ;;  %v225_v46 = vsub.f32 0.0, %v1561_v44 }
  0x8d   :  { %v135_v51 = vadd.f32 %v1288_v18, %v126_v48  ;;  %vm158_vm3 = vcmp.gt.f32.partialorder %v157_v49, 0.0  ;;  %253 = vmatpush.msra.mxu2 %v1531_v41  ;;  %373 = vmatpush.msrb.mxu1 %v1531_v41  ;;  %v1564_v47 = vperm.slane %v45_v45, 0  ;;  %v1569_v48 = vld [vmem:[%s1978_s1 + $0x7] ss:$0 sm:$0xff] }
  0x8e   :  { %v136_v53 = vadd.f32 %v1288_v18, %v127_v50  ;;  %v1219_v54 = vsel %vm158_vm3, 1.0, %v1354_v33  ;;  %v284_v55 = vld [vmem:[#allocation2 + $0x2] sm:$0x3]  ;;  %v1221_v18 = vsel %vm188_vm5, 1.0, %v1354_v33  ;;  %v192_v19 = vmul.f32 0.0, %v1490_v15 }
  0x8f   :  { %144 = vst.msk [vmem:[#allocation2 + $0xc] sm:$0x3] %vm137_vm0, %v135_v51  ;;  %1220 = vmatmul.msk.f32.vlgmr.msra.gmra.mxu0 %vm162_vm2, %v1219_v54  ;;  %v286_v56 = vadd.f32 %v285_v52, %v284_v55  ;;  %v287_v57 = vmul.f32 %v1430_v16, %v1219_v54  ;;  %v194_v22 = vmul.f32 %v1487_v8, %v1221_v18  ;;  %vm226_vm8 = vcmp.gt.f32.partialorder %v225_v46, 0.0 }
  0x90   :  { %145 = vst.msk [vmem:[#allocation2 + $0xe] sm:$0x3] %vm137_vm0, %v136_v53  ;;  %486 = vmatpush.msra.mxu0 %v1519_v38  ;;  %424 = vmatpush.msrb.mxu2 %v1405_v9  ;;  %v1224_v49 = vsel %vm226_vm8, 1.0, %v1354_v33  ;;  %v230_v50 = vmul.f32 0.0, %v1564_v47 }
  0x91   :  { %v288_v58 = vsub.f32 %v286_v56, %v287_v57  ;;  %v232_v53 = vmul.f32 %v1561_v44, %v1224_v49 }
  0x92   :  { %487 = vmatpush.msra.mxu0 %v1523_v39  ;;  %425 = vmatpush.msrb.mxu2 %v1409_v10 }
  0x93   :  { %v401_v59 = vmul.f32 %v288_v58, %v1438_v29  ;;  %v289_v60 = vsub.f32 %v288_v58, %v1430_v16 }
  0x94   :  { %488 = vmatpush.msra.mxu0 %v1529_v40  ;;  %426 = vmatpush.msrb.mxu2 %v1413_v11 }
  0x95   :  { %vm290_vm4 = vcmp.gt.f32.partialorder %v289_v60, 0.0  ;;  %v402_v63 = vadd.f32 %v401_v59, %v400_v61  ;;  %v516_v60 = vld [vmem:[#allocation2 + $0x6] sm:$0x3] }
  0x96   :  { %v1226_v62 = vsel %vm290_vm4, 1.0, %v1354_v33  ;;  %489 = vmatpush.msra.mxu0 %v1531_v41  ;;  %427 = vmatpush.msrb.mxu2 %v1417_v12  ;;  %vm280_vm4 = vcmask 263424  }
  0x97   :  { %1227 = vmatmul.msk.f32.vlgmr.msra.gmra.mxu3 %vm162_vm2, %v1226_v62  ;;  %v403_v0 = vmul.f32 %v1430_v16, %v1226_v62 }
  0x98   :  { %602 = vmatpush.msra.mxu3 %v1519_v38 }
  0x99   :  { %v1459_v1 = vsub.f32 %v402_v63, %v403_v0 }
  0x9a   :  { %603 = vmatpush.msra.mxu3 %v1523_v39 }
  0x9b   :  { %v405_v55 = vsub.f32 %v1459_v1, %v1430_v16  ;;  %v517_v59 = vmul.f32 %v1459_v1, %v1438_v29 }
  0x9c   :  { %604 = vmatpush.msra.mxu3 %v1529_v40 }
  0x9d   :  { %vm406_vm9 = vcmp.gt.f32.partialorder %v405_v55, 0.0  ;;  %v518_v7 = vadd.f32 %v517_v59, %v516_v60 }
  0x9e   :  { %605 = vmatpush.msra.mxu3 %v1531_v41  ;;  %v1232_v58 = vsel %vm406_vm9, 1.0, %v1354_v33 }
  0x9f   :  { %v519_v61 = vmul.f32 %v1430_v16, %v1232_v58 }
  0xa1   :  { %v1593_v14 = vsub.f32 %v518_v7, %v519_v61  ;;  %v1678_v7 = vld [vmem:[%s1978_s1 + $0xe] ss:$0 sm:$0xff] }
 0x10c   :  { %v183_v20 = vpop.f32.mrf.mxu0 }
 0x10d   :  { %v184_v21 = vadd.f32 %v1495_v17, %v183_v20 }
 0x10f   :  { %v193_v23 = vadd.f32 %v192_v19, %v184_v21  ;;  %v521_v19 = vsub.f32 %v1593_v14, %v1430_v16  ;;  %v48_v21 = vld [vmem:[%s1978_s1 + $0xb] sm:$0x1] }
 0x111   :  { %v195_v24 = vsub.f32 %v193_v23, %v194_v22  ;;  %vm522_vm11 = vcmp.gt.f32.partialorder %v521_v19, 0.0  ;;  %v49_v22 = vmax.f32 %v48_v21, 0.0 }
 0x112   :  { %v1608_v20 = vsel %vm522_vm11, 1.0, %v1354_v33 }
 0x113   :  { %v196_v25 = vsub.f32 %v195_v24, %v1487_v8  ;;  %v316_v30 = vmul.f32 %v195_v24, %v1490_v15  ;;  %v50_v23 = vmin.f32 %v49_v22, 1.0  ;;  %v633_v22 = vmul.f32 %v1593_v14, %v1438_v29 }
 0x115   :  { %vm197_vm6 = vcmp.gt.f32.partialorder %v196_v25, 0.0  ;;  %v1620_v24 = vperm.slane %v50_v23, 0  ;;  %v1625_v25 = vld [vmem:[%s1978_s1 + $0xa] ss:$0 sm:$0xff]  ;;  %v632_v23 = vld [vmem:[#allocation2 + $0x8] sm:$0x3] }
 0x116   :  { %v1222_v26 = vsel %vm197_vm6, 1.0, %v1354_v33 }
 0x117   :  { %1223 = vmatmul.msk.f32.vlgmr.msra.gmra.mxu1 %vm162_vm2, %v1222_v26  ;;  %v318_v31 = vmul.f32 %v1487_v8, %v1222_v26 }
 0x118   :  { %540 = vmatpush.msra.mxu1 %v1405_v9 }
 0x11a   :  { %v313_v27 = vpop.f32.mrf.mxu3  ;;  %541 = vmatpush.msra.mxu1 %v1409_v10 }
 0x11b   :  { %v314_v28 = vadd.f32 %v1495_v17, %v313_v27 }
 0x11c   :  { %542 = vmatpush.msra.mxu1 %v1413_v11 }
 0x11d   :  { %v317_v32 = vadd.f32 %v316_v30, %v314_v28  ;;  %v1632_v30 = vld [vmem:[%s1978_s1 + $0xf] ss:$0 sm:$0xff] }
 0x11e   :  { %543 = vmatpush.msra.mxu1 %v1417_v12 }
 0x11f   :  { %v1507_v34 = vsub.f32 %v317_v32, %v318_v31 }
 0x121   :  { %v320_v35 = vsub.f32 %v1507_v34, %v1487_v8 }
 0x123   :  { %vm321_vm7 = vcmp.gt.f32.partialorder %v320_v35, 0.0 }
 0x124   :  { %v1512_v36 = vsel %vm321_vm7, 1.0, %v1354_v33 }
 0x125   :  { %1229 = vmatmul.msk.f32.vlgmr.msrb.gmra.mxu0 %vm162_vm2, %v1512_v36  ;;  %v1517_v37 = vadd.f32 %v1512_v36, %v1222_v26  ;;  %v259_v26 = vmul.f32 0.0, %v1620_v24 }
 0x126   :  { %656 = vmatpush.msrb.mxu0 %v1405_v9 }
 0x128   :  { %657 = vmatpush.msrb.mxu0 %v1409_v10 }
 0x12a   :  { %658 = vmatpush.msrb.mxu0 %v1413_v11 }
 0x12c   :  { %659 = vmatpush.msrb.mxu0 %v1417_v12 }
 0x194   :  { %v221_v51 = vpop.f32.mrf.mxu1 }
 0x195   :  { %v222_v52 = vadd.f32 %v1569_v48, %v221_v51  ;;  %v434_v51 = vmul.f32 %v1487_v8, %v1512_v36 }
 0x197   :  { %v231_v54 = vadd.f32 %v230_v50, %v222_v52  ;;  %v432_v50 = vmul.f32 %v1507_v34, %v1490_v15 }
 0x199   :  { %v233_v56 = vsub.f32 %v231_v54, %v232_v53 }
 0x19b   :  { %1225 = vmatmul.msk.f32.vlgmr.msra.gmra.mxu2 %vm162_vm2, %v233_v56  ;;  %v347_v57 = vsub.f32 %v233_v56, %v1561_v44  ;;  %v351_v6 = vmul.f32 %v233_v56, %v1564_v47 }
 0x19c   :  { %571 = vmatpush.msra.mxu2 %v1461_v2 }
 0x19d   :  { %vm348_vm10 = vcmp.gt.f32.partialorder %v347_v57, 0.0 }
 0x19e   :  { %572 = vmatpush.msra.mxu2 %v1465_v3  ;;  %v1230_v63 = vsel %vm348_vm10, 1.0, %v1354_v33 }
 0x19f   :  { %v353_v13 = vmul.f32 %v1561_v44, %v1230_v63 }
 0x1a0   :  { %573 = vmatpush.msra.mxu2 %v1467_v4 }
 0x1a2   :  { %v344_v62 = vpop.f32.mrf.mxu0  ;;  %574 = vmatpush.msra.mxu2 %v1472_v5 }
 0x1a3   :  { %v345_v0 = vadd.f32 %v1569_v48, %v344_v62  ;;  %1233 = vmatmul.msk.f32.vlgmr.msrb.gmra.mxu2 %vm162_vm2, %v1232_v58 }
 0x1a4   :  { %718 = vmatpush.msrb.mxu2 %v1519_v38 }
 0x1a5   :  { %v352_v1 = vadd.f32 %v351_v6, %v345_v0 }
 0x1a6   :  { %719 = vmatpush.msrb.mxu2 %v1523_v39 }
 0x1a7   :  { %v1596_v18 = vsub.f32 %v352_v1, %v353_v13 }
 0x1a8   :  { %720 = vmatpush.msrb.mxu2 %v1529_v40 }
 0x1a9   :  { %1231 = vmatmul.msk.f32.vlgmr.msrb.gmra.mxu1 %vm162_vm2, %v1596_v18  ;;  %v467_v14 = vmul.f32 %v1596_v18, %v1564_v47 }
 0x1aa   :  { %687 = vmatpush.msrb.mxu1 %v1461_v2  ;;  %721 = vmatpush.msrb.mxu2 %v1531_v41 }
 0x1ac   :  { %688 = vmatpush.msrb.mxu1 %v1465_v3 }
 0x1ae   :  { %689 = vmatpush.msrb.mxu1 %v1467_v4 }
 0x1b0   :  { %690 = vmatpush.msrb.mxu1 %v1472_v5 }
 0x1b1   :  { %1239 = vmatmul.msk.f32.vlgmr.msra.gmra.mxu1 %vm162_vm2, %v1608_v20 }
 0x1b2   :  { %834 = vmatpush.msra.mxu1 %v1519_v38 }
 0x1b4   :  { %835 = vmatpush.msra.mxu1 %v1523_v39 }
 0x1b6   :  { %836 = vmatpush.msra.mxu1 %v1529_v40 }
 0x1b8   :  { %837 = vmatpush.msra.mxu1 %v1531_v41 }
 0x21e   :  { %v255_v27 = vpop.f32.mrf.mxu2 }
 0x21f   :  { %v256_v28 = vadd.f32 %v1625_v25, %v255_v27  ;;  %v634_v27 = vadd.f32 %v633_v22, %v632_v23 }
 0x221   :  { %v260_v31 = vadd.f32 %v259_v26, %v256_v28  ;;  %v635_v26 = vmul.f32 %v1430_v16, %v1608_v20 }
 0x223   :  { %v262_v32 = vmul.f32 %v1632_v30, %v260_v31  ;;  %v378_v46 = vmul.f32 %v260_v31, %v1620_v24  ;;  %v636_v28 = vsub.f32 %v634_v27, %v635_v26  ;;  %v463_v31 = vsub.f32 %v1596_v18, %v1561_v44 }
 0x225   :  { %v263_v35 = vsel %vm137_vm0, %v262_v32, 0.0  ;;  %vm464_vm14 = vcmp.gt.f32.partialorder %v463_v31, 0.0  ;;  %v637_v32 = vsub.f32 %v636_v28, %v1430_v16 }
 0x226   :  { %v375_v42 = vpop.f32.mrf.mxu1  ;;  %v429_v43 = vpop.f32.mrf.mxu2  ;;  %264 = vadd.xlane.f32.xlu2 %v263_v35 }
 0x227   :  { %v376_v45 = vadd.f32 %v1625_v25, %v375_v42  ;;  %v430_v49 = vadd.f32 %v1495_v17, %v429_v43  ;;  %v1236_v42 = vsel %vm464_vm14, 1.0, %v1354_v33  ;;  %vm638_vm15 = vcmp.gt.f32.partialorder %v637_v32, 0.0 }
 0x229   :  { %v1643_v52 = vadd.f32 %v378_v46, %v376_v45  ;;  %v433_v53 = vadd.f32 %v432_v50, %v430_v49  ;;  %v469_v45 = vmul.f32 %v1561_v44, %v1236_v42  ;;  %v1244_v46 = vsel %vm638_vm15, 1.0, %v1354_v33 }
 0x22a   :  { %v749_v49 = vmul.f32 %v636_v28, %v1438_v29 }
 0x22b   :  { %v435_v54 = vsub.f32 %v433_v53, %v434_v51  ;;  %v380_v55 = vmul.f32 %v1632_v30, %v1643_v52  ;;  %v748_v51 = vld [vmem:[#allocation2 + $0xa] sm:$0x3] }
 0x22d   :  { %v381_v56 = vsel %vm137_vm0, %v380_v55, 0.0  ;;  %v436_v57 = vsub.f32 %v435_v54, %v1487_v8  ;;  %v548_v34 = vmul.f32 %v435_v54, %v1490_v15  ;;  %v751_v54 = vmul.f32 %v1430_v16, %v1244_v46 }
 0x22e   :  { %v545_v58 = vpop.f32.mrf.mxu1  ;;  %382 = vadd.xlane.f32.xlu0 %v381_v56 }
 0x22f   :  { %v546_v59 = vadd.f32 %v1495_v17, %v545_v58  ;;  %vm437_vm12 = vcmp.gt.f32.partialorder %v436_v57, 0.0  ;;  %v750_v57 = vadd.f32 %v749_v49, %v748_v51 }
 0x230   :  { %v1234_v36 = vsel %vm437_vm12, 1.0, %v1354_v33 }
 0x231   :  { %v549_v60 = vadd.f32 %v548_v34, %v546_v59  ;;  %1235 = vmatmul.msk.f32.vlgmr.msrb.gmra.mxu3 %vm162_vm2, %v1234_v36  ;;  %v514_v61 = vadd.f32 %v1234_v36, %v1517_v37  ;;  %v550_v62 = vmul.f32 %v1487_v8, %v1234_v36  ;;  %v1707_v36 = vsub.f32 %v750_v57, %v751_v54 }
 0x232   :  { %772 = vmatpush.msrb.mxu3 %v1405_v9 }
 0x233   :  { %v1656_v63 = vsub.f32 %v549_v60, %v550_v62 }
 0x234   :  { %773 = vmatpush.msrb.mxu3 %v1409_v10 }
 0x235   :  { %v552_v0 = vsub.f32 %v1656_v63, %v1487_v8  ;;  %v664_v54 = vmul.f32 %v1656_v63, %v1490_v15 }
 0x236   :  { %774 = vmatpush.msrb.mxu3 %v1413_v11 }
 0x237   :  { %vm553_vm13 = vcmp.gt.f32.partialorder %v552_v0, 0.0  ;;  %v51_v0 = vld [vmem:[%s1978_s1 + $0xc] sm:$0x1] }
 0x238   :  { %v1663_v6 = vsel %vm553_vm13, 1.0, %v1354_v33  ;;  %775 = vmatpush.msrb.mxu3 %v1417_v12 }
 0x239   :  { %1241 = vmatmul.msk.f32.vlgmr.msra.gmra.mxu2 %vm162_vm2, %v1663_v6  ;;  %v1669_v37 = vadd.f32 %v1663_v6, %v514_v61  ;;  %v753_v61 = vsub.f32 %v1707_v36, %v1430_v16 }
 0x23a   :  { %888 = vmatpush.msra.mxu2 %v1405_v9 }
 0x23b   :  { %vm754_vm3 = vcmp.gt.f32.partialorder %v753_v61, 0.0 }
 0x23c   :  { %889 = vmatpush.msra.mxu2 %v1409_v10  ;;  %v1725_v62 = vsel %vm754_vm3, 1.0, %v1354_v33 }
 0x23e   :  { %890 = vmatpush.msra.mxu2 %v1413_v11 }
 0x240   :  { %891 = vmatpush.msra.mxu2 %v1417_v12 }
 0x299   :  { %v265_v1 = vpop.xlane.xlu2 %264 }
 0x29a   :  { %v267_v13 = vadd.f32 %v1678_v7, %v265_v1  ;;  %v52_v1 = vmax.f32 %v51_v0, 0.0 }
 0x29c   :  { %277 = vrot.lane.b32.xlu1 %v267_v13, %s1355_s6  ;;  %272 = vperm.xlu0 %1284, %v267_v13   ;;  %v53_v13 = vmin.f32 %v52_v1, 1.0 }
 0x2a1   :  { %v383_v19 = vpop.xlane.xlu0 %382 }
 0x2a2   :  { %v384_v21 = vadd.f32 %v1678_v7, %v383_v19  ;;  %v1738_v19 = vperm.slane %v53_v13, 0 }
 0x2a4   :  { %388 = vperm.xlu1 %1285, %v384_v21  }
 0x2ac   :  { %394 = vrot.lane.b32.xlu1 %v384_v21, %s1355_s6  ;;  %v269_v21 = vmul.f32 0.0, %v1738_v19 }
 0x2b4   :  { %v460_v35 = vpop.f32.mrf.mxu3 }
 0x2b5   :  { %v461_v43 = vadd.f32 %v1569_v48, %v460_v35 }
 0x2b7   :  { %v468_v20 = vadd.f32 %v467_v14, %v461_v43 }
 0x2b9   :  { %v470_v50 = vsub.f32 %v468_v20, %v469_v45  ;;  %v494_v45 = vmul.f32 %v1643_v52, %v1620_v24 }
 0x2bb   :  { %1237 = vmatmul.msk.f32.vlgmr.msra.gmra.mxu0 %vm162_vm2, %v470_v50  ;;  %v579_v53 = vsub.f32 %v470_v50, %v1561_v44  ;;  %v583_v56 = vmul.f32 %v470_v50, %v1564_v47 }
 0x2bc   :  { %v576_v55 = vpop.f32.mrf.mxu2  ;;  %803 = vmatpush.msra.mxu0 %v1461_v2 }
 0x2bd   :  { %v577_v18 = vadd.f32 %v1569_v48, %v576_v55  ;;  %vm580_vm1 = vcmp.gt.f32.partialorder %v579_v53, 0.0 }
 0x2be   :  { %v1242_v58 = vsel %vm580_vm1, 1.0, %v1354_v33  ;;  %804 = vmatpush.msra.mxu0 %v1465_v3 }
 0x2bf   :  { %v584_v59 = vadd.f32 %v583_v56, %v577_v18  ;;  %v585_v34 = vmul.f32 %v1561_v44, %v1242_v58  ;;  %v666_v18 = vmul.f32 %v1487_v8, %v1663_v6 }
 0x2c0   :  { %805 = vmatpush.msra.mxu0 %v1467_v4 }
 0x2c1   :  { %v1710_v60 = vsub.f32 %v584_v59, %v585_v34 }
 0x2c2   :  { %806 = vmatpush.msra.mxu0 %v1472_v5 }
 0x2c3   :  { %1243 = vmatmul.msk.f32.vlgmr.msra.gmra.mxu3 %vm162_vm2, %v1710_v60  ;;  %1245 = vmatmul.msk.f32.vlgmr.msrb.gmra.mxu0 %vm162_vm2, %v1244_v46 }
 0x2c4   :  { %919 = vmatpush.msra.mxu3 %v1461_v2  ;;  %950 = vmatpush.msrb.mxu0 %v1519_v38 }
 0x2c6   :  { %920 = vmatpush.msra.mxu3 %v1465_v3  ;;  %951 = vmatpush.msrb.mxu0 %v1523_v39 }
 0x2c8   :  { %921 = vmatpush.msra.mxu3 %v1467_v4  ;;  %952 = vmatpush.msrb.mxu0 %v1529_v40 }
 0x2ca   :  { %922 = vmatpush.msra.mxu3 %v1472_v5  ;;  %953 = vmatpush.msrb.mxu0 %v1531_v41 }
 0x2cb   :  { %1251 = vmatmul.msk.f32.vlgmr.msrb.gmra.mxu3 %vm162_vm2, %v1725_v62 }
 0x2cc   :  { %1066 = vmatpush.msrb.mxu3 %v1519_v38 }
 0x2ce   :  { %1067 = vmatpush.msrb.mxu3 %v1523_v39 }
 0x2d0   :  { %1068 = vmatpush.msrb.mxu3 %v1529_v40 }
 0x2d2   :  { %1069 = vmatpush.msrb.mxu3 %v1531_v41  ;;  %v1747_v41 = vld [vmem:[%s1978_s1 + $0xd] ss:$0 sm:$0xff]  ;;  %s1356_s1 = smov [#allocation6]  }
 0x2d3   :  { %s1203_s10 = sshll.u32 %s1356_s1, 4  ;;  %s1204_s10 = int_to_ptr.vmem [resolvable:$true] %s1203_s10 }
 0x30e   :  { %v278_v22 = vpop.permute.xlu1 %277  ;;  %v273_v23 = vpop.permute.xlu0 %272 }
 0x30f   :  { %v275_v38 = vadd.f32 %v273_v23, %v269_v21 }
 0x311   :  { %276 = vst.msk [vmem:[#allocation6] sm:$0x3] %vm137_vm0, %v275_v38  ;;  %v385_v39 = vmul.f32 %v275_v38, %v1738_v19 }
 0x312   :  { %281 = vst.msk [vmem:[#allocation6] sm:$0x3] %vm280_vm4, %v278_v22 }
 0x316   :  { %v389_v40 = vpop.permute.xlu1 %388 }
 0x317   :  { %v1749_v26 = vadd.f32 %v389_v40, %v385_v39 }
 0x319   :  { %393 = vst.msk [vmem:[#allocation6 + $0x2] sm:$0x3] %vm137_vm0, %v1749_v26  ;;  %v1753_v27 = vld [vmem:[#allocation6] sm:$0x3] }
 0x31a   :  { %v1104_v28 = vsub.f32 %v1753_v27, %v1747_v41 }
 0x31c   :  { %vm1112_vm5 = vcmp.gt.f32.partialorder %v1104_v28, 0.0  ;;  %v695_v28 = vsub.f32 %v1710_v60, %v1561_v44 }
 0x31d   :  { %v1268_v31 = vsel %vm1112_vm5, 1.0, %v1354_v33 }
 0x31e   :  { %v395_v32 = vpop.permute.xlu1 %394  ;;  %1136 = vst.msk [vmem:[#allocation6] sm:$0x3] %vm137_vm0, %v1268_v31  ;;  %vm696_vm9 = vcmp.gt.f32.partialorder %v695_v28, 0.0 }
 0x31f   :  { %397 = vst.msk [vmem:[#allocation6 + $0x2] sm:$0x3] %vm280_vm4, %v395_v32  ;;  %v867_v32 = vmul.f32 %v1430_v16, %v1725_v62 }
 0x326   :  { %v1760_v35 = vld [vmem:[#allocation6 + $0x2] sm:$0x3] }
 0x327   :  { %v1105_v42 = vsub.f32 %v1760_v35, %v1747_v41 }
 0x329   :  { %vm1113_vm6 = vcmp.gt.f32.partialorder %v1105_v42, 0.0  ;;  %v864_v42 = vld [vmem:[#allocation2 + $0xc] sm:$0x3] }
 0x32a   :  { %v1269_v43 = vsel %vm1113_vm6, 1.0, %v1354_v33 }
 0x32b   :  { %1137 = vst.msk [vmem:[#allocation6 + $0x2] sm:$0x3] %vm137_vm0, %v1269_v43 }
 0x338   :  { %v491_v14 = vpop.f32.mrf.mxu0 }
 0x339   :  { %v492_v20 = vadd.f32 %v1625_v25, %v491_v14 }
 0x33b   :  { %v495_v46 = vadd.f32 %v494_v45, %v492_v20  ;;  %v1248_v45 = vsel %vm696_vm9, 1.0, %v1354_v33  ;;  %vm1176_vm9 = vcmask 271624  }
 0x33d   :  { %v496_v49 = vmul.f32 %v1632_v30, %v495_v46  ;;  %v610_v59 = vmul.f32 %v495_v46, %v1620_v24  ;;  %v699_v46 = vmul.f32 %v1710_v60, %v1564_v47  ;;  %v980_v60 = vld [vmem:[#allocation2 + $0xe] sm:$0x3] }
 0x33f   :  { %v497_v50 = vsel %vm137_vm0, %v496_v49, 0.0 }
 0x340   :  { %v661_v51 = vpop.f32.mrf.mxu0  ;;  %498 = vadd.xlane.f32.xlu1 %v497_v50  ;;  %v701_v50 = vmul.f32 %v1561_v44, %v1248_v45 }
 0x341   :  { %v662_v53 = vadd.f32 %v1495_v17, %v661_v51 }
 0x343   :  { %v665_v55 = vadd.f32 %v664_v54, %v662_v53 }
 0x345   :  { %v667_v56 = vsub.f32 %v665_v55, %v666_v18 }
 0x346   :  { %v607_v57 = vpop.f32.mrf.mxu3 }
 0x347   :  { %v668_v52 = vsub.f32 %v667_v56, %v1487_v8  ;;  %v608_v58 = vadd.f32 %v1625_v25, %v607_v57  ;;  %v780_v21 = vmul.f32 %v667_v56, %v1490_v15 }
 0x349   :  { %v1779_v34 = vadd.f32 %v610_v59, %v608_v58  ;;  %vm669_vm7 = vcmp.gt.f32.partialorder %v668_v52, 0.0 }
 0x34a   :  { %v1246_v61 = vsel %vm669_vm7, 1.0, %v1354_v33 }
 0x34b   :  { %1247 = vmatmul.msk.f32.vlgmr.msrb.gmra.mxu1 %vm162_vm2, %v1246_v61  ;;  %v746_v63 = vadd.f32 %v1246_v61, %v1669_v37  ;;  %v612_v6 = vmul.f32 %v1632_v30, %v1779_v34  ;;  %v782_v37 = vmul.f32 %v1487_v8, %v1246_v61 }
 0x34c   :  { %1004 = vmatpush.msrb.mxu1 %v1405_v9 }
 0x34d   :  { %v613_v0 = vsel %vm137_vm0, %v612_v6, 0.0 }
 0x34e   :  { %v777_v1 = vpop.f32.mrf.mxu3  ;;  %614 = vadd.xlane.f32.xlu2 %v613_v0  ;;  %1005 = vmatpush.msrb.mxu1 %v1409_v10 }
 0x34f   :  { %v778_v13 = vadd.f32 %v1495_v17, %v777_v1 }
 0x350   :  { %1006 = vmatpush.msrb.mxu1 %v1413_v11 }
 0x351   :  { %v781_v22 = vadd.f32 %v780_v21, %v778_v13 }
 0x352   :  { %1007 = vmatpush.msrb.mxu1 %v1417_v12  ;;  %v865_v12 = vmul.f32 %v1707_v36, %v1438_v29 }
 0x353   :  { %v1794_v23 = vsub.f32 %v781_v22, %v782_v37 }
 0x354   :  { %v866_v43 = vadd.f32 %v865_v12, %v864_v42 }
 0x355   :  { %v784_v9 = vsub.f32 %v1794_v23, %v1487_v8 }
 0x356   :  { %v868_v14 = vsub.f32 %v866_v43, %v867_v32 }
 0x357   :  { %vm785_vm8 = vcmp.gt.f32.partialorder %v784_v9, 0.0 }
 0x358   :  { %v1799_v38 = vsel %vm785_vm8, 1.0, %v1354_v33  ;;  %v869_v62 = vsub.f32 %v868_v14, %v1430_v16  ;;  %v981_v55 = vmul.f32 %v868_v14, %v1438_v29 }
 0x359   :  { %1253 = vmatmul.msk.f32.vlgmr.msra.gmra.mxu0 %vm162_vm2, %v1799_v38  ;;  %v1804_v10 = vadd.f32 %v1799_v38, %v746_v63  ;;  %v501_v63 = vmul.f32 %v1749_v26, %v1738_v19 }
 0x35a   :  { %vm870_vm10 = vcmp.gt.f32.partialorder %v869_v62, 0.0  ;;  %v898_v62 = vmul.f32 %v1487_v8, %v1799_v38 }
 0x35b   :  { %v1256_v54 = vsel %vm870_vm10, 1.0, %v1354_v33 }
 0x35c   :  { %v983_v18 = vmul.f32 %v1430_v16, %v1256_v54 }
 0x3b3   :  { %v499_v11 = vpop.xlane.xlu1 %498 }
 0x3b4   :  { %v500_v39 = vadd.f32 %v1678_v7, %v499_v11 }
 0x3b6   :  { %504 = vperm.xlu2 %1286, %v500_v39   ;;  %510 = vrot.lane.b32.xlu0 %v500_v39, %s1355_s6 }
 0x3c1   :  { %v615_v40 = vpop.xlane.xlu2 %614 }
 0x3c2   :  { %v616_v31 = vadd.f32 %v1678_v7, %v615_v40 }
 0x3c4   :  { %626 = vrot.lane.b32.xlu0 %v616_v31, %s1355_s6  ;;  %620 = vperm.xlu1 %1285, %v616_v31   ;;  %v726_v31 = vmul.f32 %v1779_v34, %v1620_v24 }
 0x3c8   :  { %v692_v20 = vpop.f32.mrf.mxu1 }
 0x3c9   :  { %v693_v36 = vadd.f32 %v1569_v48, %v692_v20 }
 0x3cb   :  { %v700_v49 = vadd.f32 %v699_v46, %v693_v36 }
 0x3cd   :  { %v702_v51 = vsub.f32 %v700_v49, %v701_v50  ;;  %v896_v49 = vmul.f32 %v1794_v23, %v1490_v15 }
 0x3cf   :  { %1249 = vmatmul.msk.f32.vlgmr.msrb.gmra.mxu2 %vm162_vm2, %v702_v51  ;;  %v811_v53 = vsub.f32 %v702_v51, %v1561_v44 }
 0x3d0   :  { %1035 = vmatpush.msrb.mxu2 %v1461_v2  ;;  %v815_v2 = vmul.f32 %v702_v51, %v1564_v47 }
 0x3d1   :  { %vm812_vm11 = vcmp.gt.f32.partialorder %v811_v53, 0.0 }
 0x3d2   :  { %1036 = vmatpush.msrb.mxu2 %v1465_v3  ;;  %v1254_v57 = vsel %vm812_vm11, 1.0, %v1354_v33  ;;  %v982_v3 = vadd.f32 %v981_v55, %v980_v60 }
 0x3d3   :  { %v817_v29 = vmul.f32 %v1561_v44, %v1254_v57 }
 0x3d4   :  { %1037 = vmatpush.msrb.mxu2 %v1467_v4  ;;  %v984_v59 = vsub.f32 %v982_v3, %v983_v18 }
 0x3d6   :  { %v808_v56 = vpop.f32.mrf.mxu0  ;;  %1038 = vmatpush.msrb.mxu2 %v1472_v5  ;;  %v985_v4 = vsub.f32 %v984_v59, %v1430_v16 }
 0x3d7   :  { %v809_v52 = vadd.f32 %v1569_v48, %v808_v56  ;;  %1257 = vmatmul.msk.f32.vlgmr.msra.gmra.mxu2 %vm162_vm2, %v1256_v54 }
 0x3d8   :  { %vm986_vm12 = vcmp.gt.f32.partialorder %v985_v4, 0.0 }
 0x3d9   :  { %v816_v58 = vadd.f32 %v815_v2, %v809_v52  ;;  %v1262_v5 = vsel %vm986_vm12, 1.0, %v1354_v33 }
 0x3db   :  { %v1836_v61 = vsub.f32 %v816_v58, %v817_v29 }
 0x3dd   :  { %1255 = vmatmul.msk.f32.vlgmr.msra.gmra.mxu1 %vm162_vm2, %v1836_v61 }
 0x3e5   :  { %1263 = vmatmul.msk.f32.vlgmr.msrb.gmra.mxu1 %vm162_vm2, %v1262_v5 }
 0x410   :  { %v505_v6 = vpop.permute.xlu2 %504 }
 0x411   :  { %v507_v0 = vadd.f32 %v505_v6, %v501_v63  ;;  %v931_v6 = vmul.f32 %v1836_v61, %v1564_v47 }
 0x413   :  { %509 = vst.msk [vmem:[#allocation6 + $0x4] sm:$0x3] %vm137_vm0, %v507_v0  ;;  %v617_v22 = vmul.f32 %v507_v0, %v1738_v19 }
 0x428   :  { %v511_v1 = vpop.permute.xlu0 %510 }
 0x429   :  { %513 = vst.msk [vmem:[#allocation6 + $0x4] sm:$0x3] %vm280_vm4, %v511_v1 }
 0x430   :  { %v1847_v13 = vld [vmem:[#allocation6 + $0x4] sm:$0x3] }
 0x431   :  { %v1106_v16 = vsub.f32 %v1847_v13, %v1747_v41 }
 0x433   :  { %vm1114_vm13 = vcmp.gt.f32.partialorder %v1106_v16, 0.0 }
 0x434   :  { %v1270_v21 = vsel %vm1114_vm13, 1.0, %v1354_v33 }
 0x435   :  { %1138 = vst.msk [vmem:[#allocation6 + $0x4] sm:$0x3] %vm137_vm0, %v1270_v21 }
 0x436   :  { %v621_v26 = vpop.permute.xlu1 %620  ;;  %v627_v9 = vpop.permute.xlu0 %626 }
 0x437   :  { %v1854_v37 = vadd.f32 %v621_v26, %v617_v22 }
 0x439   :  { %625 = vst.msk [vmem:[#allocation6 + $0x6] sm:$0x3] %vm137_vm0, %v1854_v37 }
 0x43a   :  { %629 = vst.msk [vmem:[#allocation6 + $0x6] sm:$0x3] %vm280_vm4, %v627_v9 }
 0x441   :  { %v1859_v11 = vld [vmem:[#allocation6 + $0x6] sm:$0x3] }
 0x442   :  { %v1107_v39 = vsub.f32 %v1859_v11, %v1747_v41 }
 0x444   :  { %vm1115_vm14 = vcmp.gt.f32.partialorder %v1107_v39, 0.0 }
 0x445   :  { %v1271_v12 = vsel %vm1115_vm14, 1.0, %v1354_v33 }
 0x446   :  { %1139 = vst.msk [vmem:[#allocation6 + $0x6] sm:$0x3] %vm137_vm0, %v1271_v12 }
 0x452   :  { %v723_v40 = vpop.f32.mrf.mxu2 }
 0x453   :  { %v724_v28 = vadd.f32 %v1625_v25, %v723_v40 }
 0x455   :  { %v727_v32 = vadd.f32 %v726_v31, %v724_v28  ;;  %v733_v28 = vmul.f32 %v1854_v37, %v1738_v19 }
 0x457   :  { %v728_v42 = vmul.f32 %v1632_v30, %v727_v32  ;;  %v842_v36 = vmul.f32 %v727_v32, %v1620_v24 }
 0x459   :  { %v729_v43 = vsel %vm137_vm0, %v728_v42, 0.0 }
 0x45a   :  { %v839_v14 = vpop.f32.mrf.mxu1  ;;  %v893_v20 = vpop.f32.mrf.mxu2  ;;  %730 = vadd.xlane.f32.xlu0 %v729_v43 }
 0x45b   :  { %v840_v45 = vadd.f32 %v1625_v25, %v839_v14  ;;  %v894_v46 = vadd.f32 %v1495_v17, %v893_v20 }
 0x45d   :  { %v1875_v50 = vadd.f32 %v842_v36, %v840_v45  ;;  %v897_v34 = vadd.f32 %v896_v49, %v894_v46 }
 0x45f   :  { %v899_v51 = vsub.f32 %v897_v34, %v898_v62  ;;  %v844_v53 = vmul.f32 %v1632_v30, %v1875_v50  ;;  %v958_v62 = vmul.f32 %v1875_v50, %v1620_v24 }
 0x461   :  { %v900_v54 = vsub.f32 %v899_v51, %v1487_v8  ;;  %v845_v55 = vsel %vm137_vm0, %v844_v53, 0.0  ;;  %v1012_v23 = vmul.f32 %v899_v51, %v1490_v15 }
 0x462   :  { %v1009_v60 = vpop.f32.mrf.mxu1  ;;  %846 = vadd.xlane.f32.xlu2 %v845_v55 }
 0x463   :  { %vm901_vm15 = vcmp.gt.f32.partialorder %v900_v54, 0.0  ;;  %v1010_v18 = vadd.f32 %v1495_v17, %v1009_v60 }
 0x464   :  { %v1258_v56 = vsel %vm901_vm15, 1.0, %v1354_v33 }
 0x465   :  { %v1013_v57 = vadd.f32 %v1012_v23, %v1010_v18  ;;  %v1014_v38 = vmul.f32 %v1487_v8, %v1258_v56  ;;  %1259 = vmatmul.msk.f32.vlgmr.msra.gmra.mxu3 %vm162_vm2, %v1258_v56  ;;  %v978_v52 = vadd.f32 %v1258_v56, %v1804_v10 }
 0x467   :  { %v1015_v2 = vsub.f32 %v1013_v57, %v1014_v38 }
 0x469   :  { %v1016_v3 = vsub.f32 %v1015_v2, %v1487_v8  ;;  %v927_v8 = vsub.f32 %v1836_v61, %v1561_v44 }
 0x46b   :  { %vm1017_vm1 = vcmp.gt.f32.partialorder %v1016_v3, 0.0  ;;  %vm928_vm3 = vcmp.gt.f32.partialorder %v927_v8, 0.0  ;;  %v1150_v3 = vsel %vm137_vm0, %v1847_v13, 0.0 }
 0x46c   :  { %v1264_v58 = vsel %vm1017_vm1, 1.0, %v1354_v33  ;;  %v1260_v5 = vsel %vm928_vm3, 1.0, %v1354_v33 }
 0x46d   :  { %1265 = vmatmul.msk.f32.vlgmr.msrb.gmra.mxu2 %vm162_vm2, %v1264_v58  ;;  %v1892_v17 = vadd.f32 %v1264_v58, %v978_v52  ;;  %v933_v1 = vmul.f32 %v1561_v44, %v1260_v5 }
 0x4cd   :  { %v731_v15 = vpop.xlane.xlu0 %730 }
 0x4ce   :  { %v732_v29 = vadd.f32 %v1678_v7, %v731_v15 }
 0x4d0   :  { %742 = vrot.lane.b32.xlu2 %v732_v29, %s1355_s6  ;;  %736 = vperm.xlu1 %1285, %v732_v29  }
 0x4d5   :  { %v847_v59 = vpop.xlane.xlu2 %846 }
 0x4d6   :  { %v848_v4 = vadd.f32 %v1678_v7, %v847_v59 }
 0x4d8   :  { %858 = vrot.lane.b32.xlu2 %v848_v4, %s1355_s6  ;;  %852 = vperm.xlu0 %1284, %v848_v4  }
 0x4e8   :  { %v924_v10 = vpop.f32.mrf.mxu3 }
 0x4e9   :  { %v925_v63 = vadd.f32 %v1569_v48, %v924_v10 }
 0x4eb   :  { %v932_v0 = vadd.f32 %v931_v6, %v925_v63 }
 0x4ed   :  { %v934_v16 = vsub.f32 %v932_v0, %v933_v1 }
 0x4ef   :  { %1261 = vmatmul.msk.f32.vlgmr.msrb.gmra.mxu0 %vm162_vm2, %v934_v16  ;;  %v1043_v21 = vsub.f32 %v934_v16, %v1561_v44  ;;  %v1047_v9 = vmul.f32 %v934_v16, %v1564_v47 }
 0x4f0   :  { %v1040_v22 = vpop.f32.mrf.mxu2 }
 0x4f1   :  { %v1041_v26 = vadd.f32 %v1569_v48, %v1040_v22  ;;  %vm1044_vm5 = vcmp.gt.f32.partialorder %v1043_v21, 0.0 }
 0x4f2   :  { %v1266_v39 = vsel %vm1044_vm5, 1.0, %v1354_v33 }
 0x4f3   :  { %v1048_v12 = vadd.f32 %v1047_v9, %v1041_v26  ;;  %v1049_v40 = vmul.f32 %v1561_v44, %v1266_v39 }
 0x4f5   :  { %v1050_v61 = vsub.f32 %v1048_v12, %v1049_v40 }
 0x4f7   :  { %1267 = vmatmul.msk.f32.vlgmr.msrb.gmra.mxu3 %vm162_vm2, %v1050_v61 }
 0x52a   :  { %v743_v32 = vpop.permute.xlu2 %742 }
 0x532   :  { %v859_v14 = vpop.permute.xlu2 %858 }
 0x542   :  { %v737_v31 = vpop.permute.xlu1 %736 }
 0x543   :  { %v739_v42 = vadd.f32 %v737_v31, %v733_v28 }
 0x545   :  { %741 = vst.msk [vmem:[#allocation6 + $0x8] sm:$0x3] %vm137_vm0, %v739_v42  ;;  %v849_v47 = vmul.f32 %v739_v42, %v1738_v19 }
 0x546   :  { %745 = vst.msk [vmem:[#allocation6 + $0x8] sm:$0x3] %vm280_vm4, %v743_v32 }
 0x54a   :  { %v853_v48 = vpop.permute.xlu0 %852 }
 0x54b   :  { %v855_v43 = vadd.f32 %v853_v48, %v849_v47 }
 0x54d   :  { %857 = vst.msk [vmem:[#allocation6 + $0xa] sm:$0x3] %vm137_vm0, %v855_v43  ;;  %v1099_v44 = vld [vmem:[#allocation6 + $0x8] sm:$0x3] }
 0x54e   :  { %861 = vst.msk [vmem:[#allocation6 + $0xa] sm:$0x3] %vm280_vm4, %v859_v14  ;;  %v1108_v20 = vsub.f32 %v1099_v44, %v1747_v41  ;;  %v1156_v58 = vsel %vm137_vm0, %v1099_v44, 0.0 }
 0x550   :  { %vm1116_vm2 = vcmp.gt.f32.partialorder %v1108_v20, 0.0 }
 0x551   :  { %v1272_v37 = vsel %vm1116_vm2, 1.0, %v1354_v33 }
 0x552   :  { %1140 = vst.msk [vmem:[#allocation6 + $0x8] sm:$0x3] %vm137_vm0, %v1272_v37 }
 0x555   :  { %v1100_v45 = vld [vmem:[#allocation6 + $0xa] sm:$0x3] }
 0x556   :  { %v1109_v36 = vsub.f32 %v1100_v45, %v1747_v41 }
 0x558   :  { %vm1117_vm6 = vcmp.gt.f32.partialorder %v1109_v36, 0.0 }
 0x559   :  { %v1273_v46 = vsel %vm1117_vm6, 1.0, %v1354_v33 }
 0x55a   :  { %1141 = vst.msk [vmem:[#allocation6 + $0xa] sm:$0x3] %vm137_vm0, %v1273_v46 }
 0x56c   :  { %v955_v49 = vpop.f32.mrf.mxu0 }
 0x56d   :  { %v956_v34 = vadd.f32 %v1625_v25, %v955_v49 }
 0x56f   :  { %v959_v51 = vadd.f32 %v958_v62, %v956_v34 }
 0x571   :  { %v960_v53 = vmul.f32 %v1632_v30, %v959_v51  ;;  %v1074_v18 = vmul.f32 %v959_v51, %v1620_v24  ;;  %v1144_v24 = vsel %vm137_vm0, %v1753_v27, 0.0  ;;  %v1159_v27 = vsel %vm137_vm0, %v1100_v45, 0.0 }
 0x573   :  { %v961_v54 = vsel %vm137_vm0, %v960_v53, 0.0 }
 0x574   :  { %962 = vadd.xlane.f32.xlu1 %v961_v54 }
 0x57a   :  { %v1071_v55 = vpop.f32.mrf.mxu3 }
 0x57b   :  { %v1072_v60 = vadd.f32 %v1625_v25, %v1071_v55  ;;  %v1153_v25 = vsel %vm137_vm0, %v1859_v11, 0.0  ;;  %v965_v11 = vmul.f32 %v855_v43, %v1738_v19 }
 0x57d   :  { %v1075_v23 = vadd.f32 %v1074_v18, %v1072_v60 }
 0x57f   :  { %v1076_v56 = vmul.f32 %v1632_v30, %v1075_v23  ;;  %v1147_v30 = vsel %vm137_vm0, %v1760_v35, 0.0 }
 0x581   :  { %v1077_v57 = vsel %vm137_vm0, %v1076_v56, 0.0 }
 0x582   :  { %1078 = vadd.xlane.f32.xlu2 %v1077_v57 }
 0x5e7   :  { %v963_v38 = vpop.xlane.xlu1 %962 }
 0x5e8   :  { %v964_v50 = vadd.f32 %v1678_v7, %v963_v38 }
 0x5ea   :  { %974 = vrot.lane.b32.xlu2 %v964_v50, %s1355_s6  ;;  %968 = vperm.xlu0 %1284, %v964_v50  }
 0x5f5   :  { %v1079_v52 = vpop.xlane.xlu2 %1078 }
 0x5f6   :  { %v1080_v2 = vadd.f32 %v1678_v7, %v1079_v52  ;;  %v1185_v7 = vsel %vm137_vm0, %v1892_v17, 0.0 }
 0x5f8   :  { %1090 = vrot.lane.b32.xlu0 %v1080_v2, %s1355_s6  ;;  %1084 = vperm.xlu1 %1285, %v1080_v2  }
 0x613   :  { %1145 = vadd.xlane.f32.xlu2 %v1144_v24 }
 0x61b   :  { %1154 = vadd.xlane.f32.xlu2 %v1153_v25 }
 0x622   :  { %1148 = vadd.xlane.f32.xlu0 %v1147_v30  ;;  %1151 = vadd.xlane.f32.xlu1 %v1150_v3 }
 0x623   :  { %1186 = vadd.xlane.f32.xlu2 %v1185_v7 }
 0x62a   :  { %1157 = vadd.xlane.f32.xlu0 %v1156_v58 }
 0x632   :  { %1160 = vadd.xlane.f32.xlu0 %v1159_v27 }
 0x644   :  { %v975_v35 = vpop.permute.xlu2 %974 }
 0x65c   :  { %v969_v15 = vpop.permute.xlu0 %968 }
 0x65d   :  { %v971_v29 = vadd.f32 %v969_v15, %v965_v11 }
 0x65f   :  { %973 = vst.msk [vmem:[#allocation6 + $0xc] sm:$0x3] %vm137_vm0, %v971_v29  ;;  %v1081_v4 = vmul.f32 %v971_v29, %v1738_v19 }
 0x660   :  { %977 = vst.msk [vmem:[#allocation6 + $0xc] sm:$0x3] %vm280_vm4, %v975_v35 }
 0x667   :  { %v1101_v13 = vld [vmem:[#allocation6 + $0xc] sm:$0x3] }
 0x668   :  { %v1162_v59 = vsel %vm137_vm0, %v1101_v13, 0.0  ;;  %v1110_v17 = vsub.f32 %v1101_v13, %v1747_v41 }
 0x669   :  { %1163 = vadd.xlane.f32.xlu1 %v1162_v59 }
 0x66a   :  { %vm1118_vm7 = vcmp.gt.f32.partialorder %v1110_v17, 0.0  ;;  %v1085_v8 = vpop.permute.xlu1 %1084  ;;  %v1091_v63 = vpop.permute.xlu0 %1090 }
 0x66b   :  { %v1274_v10 = vsel %vm1118_vm7, 1.0, %v1354_v33  ;;  %v1087_v5 = vadd.f32 %v1085_v8, %v1081_v4 }
 0x66c   :  { %1142 = vst.msk [vmem:[#allocation6 + $0xc] sm:$0x3] %vm137_vm0, %v1274_v10 }
 0x66d   :  { %1089 = vst.msk [vmem:[#allocation6 + $0xe] sm:$0x3] %vm137_vm0, %v1087_v5 }
 0x66e   :  { %1093 = vst.msk [vmem:[#allocation6 + $0xe] sm:$0x3] %vm280_vm4, %v1091_v63  ;;  %vm1188_vm4 = vcmask 1041408  }
 0x675   :  { %v1102_v6 = vld [vmem:[#allocation6 + $0xe] sm:$0x3] }
 0x676   :  { %v1165_v0 = vsel %vm137_vm0, %v1102_v6, 0.0  ;;  %v1111_v1 = vsub.f32 %v1102_v6, %v1747_v41 }
 0x677   :  { %1166 = vadd.xlane.f32.xlu2 %v1165_v0 }
 0x678   :  { %vm1119_vm8 = vcmp.gt.f32.partialorder %v1111_v1, 0.0 }
 0x679   :  { %v1275_v19 = vsel %vm1119_vm8, 1.0, %v1354_v33 }
 0x67a   :  { %1143 = vst.msk [vmem:[#allocation6 + $0xe] sm:$0x3] %vm137_vm0, %v1275_v19  ;;  %vm1197_vm0 = vcmask 278800  }
 0x686   :  { %v1146_v16 = vpop.xlane.xlu2 %1145 }
 0x687   :  { %v1168_v21 = vmul.f32 0.03125, %v1146_v16 }
 0x689   :  { %1177 = vst.msk [vmem:[#allocation6] sm:$0x3] %vm1176_vm9, %v1168_v21 }
 0x68e   :  { %v1155_v22 = vpop.xlane.xlu2 %1154 }
 0x68f   :  { %v1171_v26 = vmul.f32 0.03125, %v1155_v22 }
 0x691   :  { %1180 = vst.msk [vmem:[#allocation6 + $0x6] sm:$0x3] %vm1176_vm9, %v1171_v26 }
 0x695   :  { %v1149_v9 = vpop.xlane.xlu0 %1148  ;;  %v1152_v39 = vpop.xlane.xlu1 %1151 }
 0x696   :  { %v1169_v12 = vmul.f32 0.03125, %v1149_v9  ;;  %v1170_v41 = vmul.f32 0.03125, %v1152_v39  ;;  %v1187_v40 = vpop.xlane.xlu2 %1186 }
 0x697   :  { %v1189_v61 = vsel %vm1188_vm4, %v1187_v40, 0.0 }
 0x698   :  { %1178 = vst.msk [vmem:[#allocation6 + $0x2] sm:$0x3] %vm1176_vm9, %v1169_v12  ;;  %v1190_v33 = vrot.slane %v1189_v61, 4 }
 0x699   :  { %1179 = vst.msk [vmem:[#allocation6 + $0x4] sm:$0x3] %vm1176_vm9, %v1170_v41 }
 0x69a   :  { %v1191_v28 = vadd.f32 %v1190_v33, %v1189_v61 }
 0x69c   :  { %v1192_v31 = vrot.slane %v1191_v28, 2 }
 0x69d   :  { %v1158_v32 = vpop.xlane.xlu0 %1157 }
 0x69e   :  { %v1193_v42 = vadd.f32 %v1192_v31, %v1191_v28  ;;  %v1172_v47 = vmul.f32 0.03125, %v1158_v32 }
 0x6a0   :  { %v1194_v48 = vrot.slane %v1193_v42, 1  ;;  %1181 = vst.msk [vmem:[#allocation6 + $0x8] sm:$0x3] %vm1176_vm9, %v1172_v47 }
 0x6a2   :  { %v1195_v43 = vadd.f32 %v1194_v48, %v1193_v42 }
 0x6a4   :  { %v1196_v14 = vmul.f32 0.001953125, %v1195_v43 }
 0x6a5   :  { %v1161_v44 = vpop.xlane.xlu0 %1160 }
 0x6a6   :  { %1198 = vst.msk [vmem:[#allocation6] sm:$0x1] %vm1197_vm0, %v1196_v14  ;;  %v1173_v20 = vmul.f32 0.03125, %v1161_v44 }
 0x6a8   :  { %1182 = vst.msk [vmem:[#allocation6 + $0xa] sm:$0x3] %vm1176_vm9, %v1173_v20 }
 0x6dc   :  { %v1164_v37 = vpop.xlane.xlu1 %1163 }
 0x6dd   :  { %v1174_v45 = vmul.f32 0.03125, %v1164_v37 }
 0x6df   :  { %1183 = vst.msk [vmem:[#allocation6 + $0xc] sm:$0x3] %vm1176_vm9, %v1174_v45 }
 0x6ea   :  { %v1167_v36 = vpop.xlane.xlu2 %1166 }
 0x6eb   :  { %v1175_v46 = vmul.f32 0.03125, %v1167_v36 }
 0x6ed   :  { %1184 = vst.msk [vmem:[#allocation6 + $0xe] sm:$0x3] %vm1176_vm9, %v1175_v46 }
 0x6ee   :  { %1211 = dma.vmem_to_hbm [thread:$0]  %s1204_s10, 256, %s1206_s13, [#allocation5], %s1355_s6, %s1355_s6, %s1357_s14  }
 0x6ef   :  { %1348 = dma.done.wait [#allocation5], 256  }
 0x6f0   :  { %1349 = vsyncadd [#allocation5], 4294967040 }
 0x6f1   :  { %1216 = vsyncpa [#allocation4], 1 }
 0x6f2   :  { %1217 = vsyncpa [#allocation5], 1 }

</bundles_post_ra>
